<compile_context>
chip_gen: v7x
topology: tpu7x:2x2x1
jax: 0.10.0
libtpu: 0.0.40
codegen_flags: <defaults>
</compile_context>

<pallas_src>
import jax
import jax.numpy as jnp
from jax import lax
from jax.experimental import pallas as pl
from jax.experimental.pallas import tpu as pltpu
import numpy as np

# ---------------- model hyperparams (small, consistent with the module) -----
VOCAB_SIZE = 50
EMBED_DIM = 32
HIDDEN_DIM = 32
BATCH = 2
SEQ = 8
B_PAD = 8                      # fused siamese batch (2*BATCH = 4) padded to 8 sublanes
G4 = 4 * HIDDEN_DIM            # gate width (i, f, g, o)


# ---------------------------- Pallas kernel ---------------------------------
def siamese_lstm_kernel(tok1_ref, tok2_ref, len1_ref, len2_ref,
                        emb_ref, wih_ref, whh_ref, bias_ref,
                        out1_ref, out2_ref,
                        p_ref, gx_ref):
    """Fused-siamese, length-masked single-layer LSTM (one call for both branches).

    tok1_ref/tok2_ref: (BATCH, T) i32  SMEM  token ids per branch
    len1_ref/len2_ref: (BATCH,)   i32  SMEM  valid lengths per branch
    emb_ref:  (V, E)   bf16 VMEM  embedding table
    wih_ref:  (E, 4H)  bf16 VMEM  W_ih^T   (g-gate columns pre-scaled by 2)
    whh_ref:  (H, 4H)  bf16 VMEM  W_hh^T   (g-gate columns pre-scaled by 2)
    bias_ref: (1, 4H)  f32  VMEM  b_ih + b_hh (g-gate lanes pre-scaled by 2)
    out1_ref/out2_ref: (BATCH, H) f32 — hidden state at t = len-1 per sequence
    p_ref:    (V, 4H)   f32 VMEM scratch — pre-projected input-gate table
    gx_ref:   (T*B, 4H) f32 VMEM scratch — gathered time-major input gates
    """
    H, B, T = HIDDEN_DIM, B_PAD, SEQ

    # ---- 1. Pre-projected input-gate table (one tiny GEMM, off the chain) --
    # P[v] = emb[v] @ W_ih^T + (b_ih + b_hh); g-gate lanes already x2-scaled.
    p_ref[...] = (jnp.dot(emb_ref[...], wih_ref[...],
                          preferred_element_type=jnp.float32) + bias_ref[...])

    # ---- 2. Token gather -> time-major (T*B, 4H) input gates ---------------
    # Padding rows (b >= 2*BATCH) stay zero; they are masked by length 0.
    gx_ref[...] = jnp.zeros_like(gx_ref)
    for b in range(2 * BATCH):
        tref, bb = (tok1_ref, b) if b < BATCH else (tok2_ref, b - BATCH)
        for t in range(T):
            tok = tref[bb, t]                                  # SMEM scalar read
            gx_ref[pl.ds(t * B + b, 1), :] = p_ref[pl.ds(tok, 1), :]

    # ---- 3. Hoisted (B, H) length broadcast (no per-step broadcast_in_dim) -
    row_idx = lax.broadcasted_iota(jnp.int32, (B, H), 0)
    len_bh = jnp.zeros((B, H), jnp.int32)                      # padded rows: 0
    for b in range(BATCH):
        len_bh = jnp.where(row_idx == b, len1_ref[b], len_bh)
        len_bh = jnp.where(row_idx == BATCH + b, len2_ref[b], len_bh)

    whh = whh_ref[...]                                         # (H, 4H) bf16, loaded once

    # ---- 4. Recurrence: fully unrolled, static aligned slices, vreg carries -
    h = jnp.zeros((B, H), jnp.float32)
    c = jnp.zeros((B, H), jnp.float32)
    for t in range(T):
        g_t = gx_ref[pl.ds(t * B, B), :]                       # (B, 4H) static (8,128) tile
        gates = g_t + jnp.dot(h.astype(jnp.bfloat16), whh,
                              preferred_element_type=jnp.float32)
        sg = jax.nn.sigmoid(gates)                             # ONE full-width EUP push
        i_g = sg[:, 0 * H:1 * H]
        f_g = sg[:, 1 * H:2 * H]
        g_g = 2.0 * sg[:, 2 * H:3 * H] - 1.0                   # tanh(x) = 2*sigmoid(2x) - 1
        o_g = sg[:, 3 * H:4 * H]
        c_new = f_g * c + i_g * g_g
        h_new = o_g * jnp.tanh(c_new)                          # second (last) EUP push
        # pack_padded_sequence semantics: state advances only while t < length.
        valid = len_bh > t
        h = jnp.where(valid, h_new, h)
        c = jnp.where(valid, c_new, c)

    out1_ref[...] = h[0:BATCH, :]
    out2_ref[...] = h[BATCH:2 * BATCH, :]


# --------------------------- parameter prep ----------------------------------
def prepare_params(params):
    """One-time parameter prep: transpose, bf16 cast, bias fold, g-gate x2 scale."""
    H = HIDDEN_DIM
    g_scale = jnp.ones((4 * H, 1), jnp.float32).at[2 * H:3 * H].set(2.0)
    w_ih_s = params["w_ih"] * g_scale                          # scale g-gate rows by 2
    w_hh_s = params["w_hh"] * g_scale
    bias_s = (params["b_ih"] + params["b_hh"]) * g_scale[:, 0]
    return {
        "emb": params["emb"].astype(jnp.bfloat16),             # (V, E)
        "w_ih_t": w_ih_s.T.astype(jnp.bfloat16),               # (E, 4H)
        "w_hh_t": w_hh_s.T.astype(jnp.bfloat16),               # (H, 4H)
        "bias": bias_s.reshape(1, -1),                         # (1, 4H) f32
    }


# --------------------------- forward (wrapper) --------------------------------
@jax.jit
def siamese_forward(prepped, input1, lengths1, input2, lengths2):
    # The jitted forward is exactly one pallas_call: all per-call glue
    # (embedding gather, layout, casts, branch fusion) happens in-kernel.
    smem = lambda: pl.BlockSpec(memory_space=pltpu.MemorySpace.SMEM)
    vmem = lambda: pl.BlockSpec(memory_space=pltpu.MemorySpace.VMEM)
    out1, out2 = pl.pallas_call(
        siamese_lstm_kernel,
        out_shape=(jax.ShapeDtypeStruct((BATCH, HIDDEN_DIM), jnp.float32),
                   jax.ShapeDtypeStruct((BATCH, HIDDEN_DIM), jnp.float32)),
        in_specs=[smem(), smem(), smem(), smem(),
                  vmem(), vmem(), vmem(), vmem()],
        out_specs=(vmem(), vmem()),
        scratch_shapes=[
            pltpu.VMEM((VOCAB_SIZE, G4), jnp.float32),         # P table
            pltpu.VMEM((SEQ * B_PAD, G4), jnp.float32),        # gathered input gates
        ],
    )(input1.astype(jnp.int32), input2.astype(jnp.int32),
      lengths1.astype(jnp.int32), lengths2.astype(jnp.int32),
      prepped["emb"], prepped["w_ih_t"], prepped["w_hh_t"], prepped["bias"])
    return out1, out2


# ----------------------------- parameters -----------------------------------
def init_params(key):
    k_emb, k1, k2, k3, k4 = jax.random.split(key, 5)
    emb = jax.random.normal(k_emb, (VOCAB_SIZE, EMBED_DIM), jnp.float32)
    bound = 1.0 / np.sqrt(HIDDEN_DIM)
    w_ih = jax.random.uniform(k1, (4 * HIDDEN_DIM, EMBED_DIM), jnp.float32, -bound, bound)
    w_hh = jax.random.uniform(k2, (4 * HIDDEN_DIM, HIDDEN_DIM), jnp.float32, -bound, bound)
    b_ih = jax.random.uniform(k3, (4 * HIDDEN_DIM,), jnp.float32, -bound, bound)
    b_hh = jax.random.uniform(k4, (4 * HIDDEN_DIM,), jnp.float32, -bound, bound)
    return {"emb": emb, "w_ih": w_ih, "w_hh": w_hh, "b_ih": b_ih, "b_hh": b_hh}


# ---------------------- pure-JAX reference (for checking) --------------------
def forward_once_ref(params, tokens_bt, lengths_b):
    embedded = jnp.take(params["emb"], tokens_bt, axis=0)      # (B, T, E)
    H = HIDDEN_DIM
    w_ih_t = params["w_ih"].T
    w_hh_t = params["w_hh"].T
    bias = params["b_ih"] + params["b_hh"]
    lengths = lengths_b.astype(jnp.int32).reshape(-1, 1)

    def step(carry, inp):
        h, c = carry
        x_t, t = inp
        gates = x_t @ w_ih_t + h @ w_hh_t + bias
        i = jax.nn.sigmoid(gates[:, 0 * H:1 * H])
        f = jax.nn.sigmoid(gates[:, 1 * H:2 * H])
        g = jnp.tanh(gates[:, 2 * H:3 * H])
        o = jax.nn.sigmoid(gates[:, 3 * H:4 * H])
        c_new = f * c + i * g
        h_new = o * jnp.tanh(c_new)
        valid = t < lengths
        h = jnp.where(valid, h_new, h)
        c = jnp.where(valid, c_new, c)
        return (h, c), None

    B = tokens_bt.shape[0]
    h0 = jnp.zeros((B, H), jnp.float32)
    c0 = jnp.zeros((B, H), jnp.float32)
    xs = (jnp.transpose(embedded, (1, 0, 2)), jnp.arange(SEQ))
    (h, _), _ = lax.scan(step, (h0, c0), xs)
    return h


# --------------------------------- main --------------------------------------
if __name__ == "__main__":
    key = jax.random.PRNGKey(0)
    k_params, k_tok1, k_tok2 = jax.random.split(key, 3)

    params = init_params(k_params)
    prepped = prepare_params(params)            # one-time parameter prep

    input1 = jax.random.randint(k_tok1, (BATCH, SEQ), 0, VOCAB_SIZE, dtype=jnp.int32)
    input2 = jax.random.randint(k_tok2, (BATCH, SEQ), 0, VOCAB_SIZE, dtype=jnp.int32)
    lengths1 = jnp.array([8, 5], dtype=jnp.int32)   # per-sequence valid lengths (>= 1)
    lengths2 = jnp.array([6, 8], dtype=jnp.int32)

    out1, out2 = siamese_forward(prepped, input1, lengths1, input2, lengths2)
    out1 = jax.block_until_ready(out1)
    out2 = jax.block_until_ready(out2)

    # Sanity check against a pure-JAX f32 reference (kernel uses bf16 MXU
    # operands with f32 accumulation, so a modest tolerance is expected).
    ref1 = forward_once_ref(params, input1, lengths1)
    ref2 = forward_once_ref(params, input2, lengths2)
    np.testing.assert_allclose(np.asarray(out1), np.asarray(ref1), atol=5e-2, rtol=5e-2)
    np.testing.assert_allclose(np.asarray(out2), np.asarray(ref2), atol=5e-2, rtol=5e-2)

    assert out1.shape == (BATCH, HIDDEN_DIM) and out2.shape == (BATCH, HIDDEN_DIM)
    print("KERNEL_OK")
</pallas_src>

<mosaic_0001>
module attributes {stable_mosaic.version = 11 : i64} {
  func.func @siamese_lstm_kernel(%arg0: memref<2x8xi32, #tpu.memory_space<smem>>, %arg1: memref<2x8xi32, #tpu.memory_space<smem>>, %arg2: memref<2xi32, #tpu.memory_space<smem>>, %arg3: memref<2xi32, #tpu.memory_space<smem>>, %arg4: memref<50x32xbf16, #tpu.memory_space<vmem>>, %arg5: memref<32x128xbf16, #tpu.memory_space<vmem>>, %arg6: memref<32x128xbf16, #tpu.memory_space<vmem>>, %arg7: memref<1x128xf32, #tpu.memory_space<vmem>>, %arg8: memref<2x32xf32, #tpu.memory_space<vmem>>, %arg9: memref<2x32xf32, #tpu.memory_space<vmem>>, %arg10: memref<50x128xf32, #tpu.memory_space<vmem>>, %arg11: memref<64x128xf32, #tpu.memory_space<vmem>>) attributes {dimension_semantics = [], scalar_prefetch = 0 : i64, scratch_operands = 2 : i64, tpu.core_type = #tpu.core_type<tc>} {
    %c0 = arith.constant 0 : index
    %c0_0 = arith.constant 0 : index
    %0 = vector.load %arg4[%c0, %c0_0] : memref<50x32xbf16, #tpu.memory_space<vmem>>, vector<50x32xbf16>
    %c0_1 = arith.constant 0 : index
    %c0_2 = arith.constant 0 : index
    %1 = vector.load %arg5[%c0_1, %c0_2] : memref<32x128xbf16, #tpu.memory_space<vmem>>, vector<32x128xbf16>
    %cst = arith.constant dense<0.000000e+00> : vector<50x128xf32>
    %2 = tpu.matmul %0, %1, %cst {dimension_numbers = #tpu.dot_dimension_numbers<[1], [0], [0], [1], [0, 0, 1, 1], [], []>} : vector<50x32xbf16>, vector<32x128xbf16>, vector<50x128xf32> -> vector<50x128xf32>
    %c0_3 = arith.constant 0 : index
    %c0_4 = arith.constant 0 : index
    %3 = vector.load %arg7[%c0_3, %c0_4] : memref<1x128xf32, #tpu.memory_space<vmem>>, vector<1x128xf32>
    %4 = vector.broadcast %3 : vector<1x128xf32> to vector<50x128xf32>
    %5 = arith.addf %2, %4 : vector<50x128xf32>
    %c0_5 = arith.constant 0 : index
    %c0_6 = arith.constant 0 : index
    %6 = vector.load %arg10[%c0_5, %c0_6] : memref<50x128xf32, #tpu.memory_space<vmem>>, vector<50x128xf32>
    tpu.vector_store %arg10[%c0_5, %c0_6], %5 {strides = array<i32>} : memref<50x128xf32, #tpu.memory_space<vmem>>, vector<50x128xf32>,
    %cst_7 = arith.constant 0.000000e+00 : f32
    %7 = vector.broadcast %cst_7 : f32 to vector<64x128xf32>
    %c0_8 = arith.constant 0 : index
    %c0_9 = arith.constant 0 : index
    %8 = vector.load %arg11[%c0_8, %c0_9] : memref<64x128xf32, #tpu.memory_space<vmem>>, vector<64x128xf32>
    tpu.vector_store %arg11[%c0_8, %c0_9], %7 {strides = array<i32>} : memref<64x128xf32, #tpu.memory_space<vmem>>, vector<64x128xf32>,
    %c0_10 = arith.constant 0 : index
    %c0_11 = arith.constant 0 : index
    %9 = memref.load %arg0[%c0_10, %c0_11] : memref<2x8xi32, #tpu.memory_space<smem>>
    %10 = arith.index_cast %9 : i32 to index
    %c0_12 = arith.constant 0 : index
    %11 = vector.load %arg10[%10, %c0_12] : memref<50x128xf32, #tpu.memory_space<vmem>>, vector<1x128xf32>
    %c0_13 = arith.constant 0 : index
    %c0_14 = arith.constant 0 : index
    %12 = vector.load %arg11[%c0_13, %c0_14] : memref<64x128xf32, #tpu.memory_space<vmem>>, vector<1x128xf32>
    tpu.vector_store %arg11[%c0_13, %c0_14], %11 {strides = array<i32>} : memref<64x128xf32, #tpu.memory_space<vmem>>, vector<1x128xf32>,
    %c0_15 = arith.constant 0 : index
    %c1 = arith.constant 1 : index
    %13 = memref.load %arg0[%c0_15, %c1] : memref<2x8xi32, #tpu.memory_space<smem>>
    %14 = arith.index_cast %13 : i32 to index
    %c0_16 = arith.constant 0 : index
    %15 = vector.load %arg10[%14, %c0_16] : memref<50x128xf32, #tpu.memory_space<vmem>>, vector<1x128xf32>
    %c8 = arith.constant 8 : index
    %c0_17 = arith.constant 0 : index
    %16 = vector.load %arg11[%c8, %c0_17] : memref<64x128xf32, #tpu.memory_space<vmem>>, vector<1x128xf32>
    tpu.vector_store %arg11[%c8, %c0_17], %15 {strides = array<i32>} : memref<64x128xf32, #tpu.memory_space<vmem>>, vector<1x128xf32>,
    %c0_18 = arith.constant 0 : index
    %c2 = arith.constant 2 : index
    %17 = memref.load %arg0[%c0_18, %c2] : memref<2x8xi32, #tpu.memory_space<smem>>
    %18 = arith.index_cast %17 : i32 to index
    %c0_19 = arith.constant 0 : index
    %19 = vector.load %arg10[%18, %c0_19] : memref<50x128xf32, #tpu.memory_space<vmem>>, vector<1x128xf32>
    %c16 = arith.constant 16 : index
    %c0_20 = arith.constant 0 : index
    %20 = vector.load %arg11[%c16, %c0_20] : memref<64x128xf32, #tpu.memory_space<vmem>>, vector<1x128xf32>
    tpu.vector_store %arg11[%c16, %c0_20], %19 {strides = array<i32>} : memref<64x128xf32, #tpu.memory_space<vmem>>, vector<1x128xf32>,
    %c0_21 = arith.constant 0 : index
    %c3 = arith.constant 3 : index
    %21 = memref.load %arg0[%c0_21, %c3] : memref<2x8xi32, #tpu.memory_space<smem>>
    %22 = arith.index_cast %21 : i32 to index
    %c0_22 = arith.constant 0 : index
    %23 = vector.load %arg10[%22, %c0_22] : memref<50x128xf32, #tpu.memory_space<vmem>>, vector<1x128xf32>
    %c24 = arith.constant 24 : index
    %c0_23 = arith.constant 0 : index
    %24 = vector.load %arg11[%c24, %c0_23] : memref<64x128xf32, #tpu.memory_space<vmem>>, vector<1x128xf32>
    tpu.vector_store %arg11[%c24, %c0_23], %23 {strides = array<i32>} : memref<64x128xf32, #tpu.memory_space<vmem>>, vector<1x128xf32>,
    %c0_24 = arith.constant 0 : index
    %c4 = arith.constant 4 : index
    %25 = memref.load %arg0[%c0_24, %c4] : memref<2x8xi32, #tpu.memory_space<smem>>
    %26 = arith.index_cast %25 : i32 to index
    %c0_25 = arith.constant 0 : index
    %27 = vector.load %arg10[%26, %c0_25] : memref<50x128xf32, #tpu.memory_space<vmem>>, vector<1x128xf32>
    %c32 = arith.constant 32 : index
    %c0_26 = arith.constant 0 : index
    %28 = vector.load %arg11[%c32, %c0_26] : memref<64x128xf32, #tpu.memory_space<vmem>>, vector<1x128xf32>
    tpu.vector_store %arg11[%c32, %c0_26], %27 {strides = array<i32>} : memref<64x128xf32, #tpu.memory_space<vmem>>, vector<1x128xf32>,
    %c0_27 = arith.constant 0 : index
    %c5 = arith.constant 5 : index
    %29 = memref.load %arg0[%c0_27, %c5] : memref<2x8xi32, #tpu.memory_space<smem>>
    %30 = arith.index_cast %29 : i32 to index
    %c0_28 = arith.constant 0 : index
    %31 = vector.load %arg10[%30, %c0_28] : memref<50x128xf32, #tpu.memory_space<vmem>>, vector<1x128xf32>
    %c40 = arith.constant 40 : index
    %c0_29 = arith.constant 0 : index
    %32 = vector.load %arg11[%c40, %c0_29] : memref<64x128xf32, #tpu.memory_space<vmem>>, vector<1x128xf32>
    tpu.vector_store %arg11[%c40, %c0_29], %31 {strides = array<i32>} : memref<64x128xf32, #tpu.memory_space<vmem>>, vector<1x128xf32>,
    %c0_30 = arith.constant 0 : index
    %c6 = arith.constant 6 : index
    %33 = memref.load %arg0[%c0_30, %c6] : memref<2x8xi32, #tpu.memory_space<smem>>
    %34 = arith.index_cast %33 : i32 to index
    %c0_31 = arith.constant 0 : index
    %35 = vector.load %arg10[%34, %c0_31] : memref<50x128xf32, #tpu.memory_space<vmem>>, vector<1x128xf32>
    %c48 = arith.constant 48 : index
    %c0_32 = arith.constant 0 : index
    %36 = vector.load %arg11[%c48, %c0_32] : memref<64x128xf32, #tpu.memory_space<vmem>>, vector<1x128xf32>
    tpu.vector_store %arg11[%c48, %c0_32], %35 {strides = array<i32>} : memref<64x128xf32, #tpu.memory_space<vmem>>, vector<1x128xf32>,
    %c0_33 = arith.constant 0 : index
    %c7 = arith.constant 7 : index
    %37 = memref.load %arg0[%c0_33, %c7] : memref<2x8xi32, #tpu.memory_space<smem>>
    %38 = arith.index_cast %37 : i32 to index
    %c0_34 = arith.constant 0 : index
    %39 = vector.load %arg10[%38, %c0_34] : memref<50x128xf32, #tpu.memory_space<vmem>>, vector<1x128xf32>
    %c56 = arith.constant 56 : index
    %c0_35 = arith.constant 0 : index
    %40 = vector.load %arg11[%c56, %c0_35] : memref<64x128xf32, #tpu.memory_space<vmem>>, vector<1x128xf32>
    tpu.vector_store %arg11[%c56, %c0_35], %39 {strides = array<i32>} : memref<64x128xf32, #tpu.memory_space<vmem>>, vector<1x128xf32>,
    %c1_36 = arith.constant 1 : index
    %c0_37 = arith.constant 0 : index
    %41 = memref.load %arg0[%c1_36, %c0_37] : memref<2x8xi32, #tpu.memory_space<smem>>
    %42 = arith.index_cast %41 : i32 to index
    %c0_38 = arith.constant 0 : index
    %43 = vector.load %arg10[%42, %c0_38] : memref<50x128xf32, #tpu.memory_space<vmem>>, vector<1x128xf32>
    %c1_39 = arith.constant 1 : index
    %c0_40 = arith.constant 0 : index
    %44 = vector.load %arg11[%c1_39, %c0_40] : memref<64x128xf32, #tpu.memory_space<vmem>>, vector<1x128xf32>
    tpu.vector_store %arg11[%c1_39, %c0_40], %43 {strides = array<i32>} : memref<64x128xf32, #tpu.memory_space<vmem>>, vector<1x128xf32>,
    %c1_41 = arith.constant 1 : index
    %c1_42 = arith.constant 1 : index
    %45 = memref.load %arg0[%c1_41, %c1_42] : memref<2x8xi32, #tpu.memory_space<smem>>
    %46 = arith.index_cast %45 : i32 to index
    %c0_43 = arith.constant 0 : index
    %47 = vector.load %arg10[%46, %c0_43] : memref<50x128xf32, #tpu.memory_space<vmem>>, vector<1x128xf32>
    %c9 = arith.constant 9 : index
    %c0_44 = arith.constant 0 : index
    %48 = vector.load %arg11[%c9, %c0_44] : memref<64x128xf32, #tpu.memory_space<vmem>>, vector<1x128xf32>
    tpu.vector_store %arg11[%c9, %c0_44], %47 {strides = array<i32>} : memref<64x128xf32, #tpu.memory_space<vmem>>, vector<1x128xf32>,
    %c1_45 = arith.constant 1 : index
    %c2_46 = arith.constant 2 : index
    %49 = memref.load %arg0[%c1_45, %c2_46] : memref<2x8xi32, #tpu.memory_space<smem>>
    %50 = arith.index_cast %49 : i32 to index
    %c0_47 = arith.constant 0 : index
    %51 = vector.load %arg10[%50, %c0_47] : memref<50x128xf32, #tpu.memory_space<vmem>>, vector<1x128xf32>
    %c17 = arith.constant 17 : index
    %c0_48 = arith.constant 0 : index
    %52 = vector.load %arg11[%c17, %c0_48] : memref<64x128xf32, #tpu.memory_space<vmem>>, vector<1x128xf32>
    tpu.vector_store %arg11[%c17, %c0_48], %51 {strides = array<i32>} : memref<64x128xf32, #tpu.memory_space<vmem>>, vector<1x128xf32>,
    %c1_49 = arith.constant 1 : index
    %c3_50 = arith.constant 3 : index
    %53 = memref.load %arg0[%c1_49, %c3_50] : memref<2x8xi32, #tpu.memory_space<smem>>
    %54 = arith.index_cast %53 : i32 to index
    %c0_51 = arith.constant 0 : index
    %55 = vector.load %arg10[%54, %c0_51] : memref<50x128xf32, #tpu.memory_space<vmem>>, vector<1x128xf32>
    %c25 = arith.constant 25 : index
    %c0_52 = arith.constant 0 : index
    %56 = vector.load %arg11[%c25, %c0_52] : memref<64x128xf32, #tpu.memory_space<vmem>>, vector<1x128xf32>
    tpu.vector_store %arg11[%c25, %c0_52], %55 {strides = array<i32>} : memref<64x128xf32, #tpu.memory_space<vmem>>, vector<1x128xf32>,
    %c1_53 = arith.constant 1 : index
    %c4_54 = arith.constant 4 : index
    %57 = memref.load %arg0[%c1_53, %c4_54] : memref<2x8xi32, #tpu.memory_space<smem>>
    %58 = arith.index_cast %57 : i32 to index
    %c0_55 = arith.constant 0 : index
    %59 = vector.load %arg10[%58, %c0_55] : memref<50x128xf32, #tpu.memory_space<vmem>>, vector<1x128xf32>
    %c33 = arith.constant 33 : index
    %c0_56 = arith.constant 0 : index
    %60 = vector.load %arg11[%c33, %c0_56] : memref<64x128xf32, #tpu.memory_space<vmem>>, vector<1x128xf32>
    tpu.vector_store %arg11[%c33, %c0_56], %59 {strides = array<i32>} : memref<64x128xf32, #tpu.memory_space<vmem>>, vector<1x128xf32>,
    %c1_57 = arith.constant 1 : index
    %c5_58 = arith.constant 5 : index
    %61 = memref.load %arg0[%c1_57, %c5_58] : memref<2x8xi32, #tpu.memory_space<smem>>
    %62 = arith.index_cast %61 : i32 to index
    %c0_59 = arith.constant 0 : index
    %63 = vector.load %arg10[%62, %c0_59] : memref<50x128xf32, #tpu.memory_space<vmem>>, vector<1x128xf32>
    %c41 = arith.constant 41 : index
    %c0_60 = arith.constant 0 : index
    %64 = vector.load %arg11[%c41, %c0_60] : memref<64x128xf32, #tpu.memory_space<vmem>>, vector<1x128xf32>
    tpu.vector_store %arg11[%c41, %c0_60], %63 {strides = array<i32>} : memref<64x128xf32, #tpu.memory_space<vmem>>, vector<1x128xf32>,
    %c1_61 = arith.constant 1 : index
    %c6_62 = arith.constant 6 : index
    %65 = memref.load %arg0[%c1_61, %c6_62] : memref<2x8xi32, #tpu.memory_space<smem>>
    %66 = arith.index_cast %65 : i32 to index
    %c0_63 = arith.constant 0 : index
    %67 = vector.load %arg10[%66, %c0_63] : memref<50x128xf32, #tpu.memory_space<vmem>>, vector<1x128xf32>
    %c49 = arith.constant 49 : index
    %c0_64 = arith.constant 0 : index
    %68 = vector.load %arg11[%c49, %c0_64] : memref<64x128xf32, #tpu.memory_space<vmem>>, vector<1x128xf32>
    tpu.vector_store %arg11[%c49, %c0_64], %67 {strides = array<i32>} : memref<64x128xf32, #tpu.memory_space<vmem>>, vector<1x128xf32>,
    %c1_65 = arith.constant 1 : index
    %c7_66 = arith.constant 7 : index
    %69 = memref.load %arg0[%c1_65, %c7_66] : memref<2x8xi32, #tpu.memory_space<smem>>
    %70 = arith.index_cast %69 : i32 to index
    %c0_67 = arith.constant 0 : index
    %71 = vector.load %arg10[%70, %c0_67] : memref<50x128xf32, #tpu.memory_space<vmem>>, vector<1x128xf32>
    %c57 = arith.constant 57 : index
    %c0_68 = arith.constant 0 : index
    %72 = vector.load %arg11[%c57, %c0_68] : memref<64x128xf32, #tpu.memory_space<vmem>>, vector<1x128xf32>
    tpu.vector_store %arg11[%c57, %c0_68], %71 {strides = array<i32>} : memref<64x128xf32, #tpu.memory_space<vmem>>, vector<1x128xf32>,
    %c0_69 = arith.constant 0 : index
    %c0_70 = arith.constant 0 : index
    %73 = memref.load %arg1[%c0_69, %c0_70] : memref<2x8xi32, #tpu.memory_space<smem>>
    %74 = arith.index_cast %73 : i32 to index
    %c0_71 = arith.constant 0 : index
    %75 = vector.load %arg10[%74, %c0_71] : memref<50x128xf32, #tpu.memory_space<vmem>>, vector<1x128xf32>
    %c2_72 = arith.constant 2 : index
    %c0_73 = arith.constant 0 : index
    %76 = vector.load %arg11[%c2_72, %c0_73] : memref<64x128xf32, #tpu.memory_space<vmem>>, vector<1x128xf32>
    tpu.vector_store %arg11[%c2_72, %c0_73], %75 {strides = array<i32>} : memref<64x128xf32, #tpu.memory_space<vmem>>, vector<1x128xf32>,
    %c0_74 = arith.constant 0 : index
    %c1_75 = arith.constant 1 : index
    %77 = memref.load %arg1[%c0_74, %c1_75] : memref<2x8xi32, #tpu.memory_space<smem>>
    %78 = arith.index_cast %77 : i32 to index
    %c0_76 = arith.constant 0 : index
    %79 = vector.load %arg10[%78, %c0_76] : memref<50x128xf32, #tpu.memory_space<vmem>>, vector<1x128xf32>
    %c10 = arith.constant 10 : index
    %c0_77 = arith.constant 0 : index
    %80 = vector.load %arg11[%c10, %c0_77] : memref<64x128xf32, #tpu.memory_space<vmem>>, vector<1x128xf32>
    tpu.vector_store %arg11[%c10, %c0_77], %79 {strides = array<i32>} : memref<64x128xf32, #tpu.memory_space<vmem>>, vector<1x128xf32>,
    %c0_78 = arith.constant 0 : index
    %c2_79 = arith.constant 2 : index
    %81 = memref.load %arg1[%c0_78, %c2_79] : memref<2x8xi32, #tpu.memory_space<smem>>
    %82 = arith.index_cast %81 : i32 to index
    %c0_80 = arith.constant 0 : index
    %83 = vector.load %arg10[%82, %c0_80] : memref<50x128xf32, #tpu.memory_space<vmem>>, vector<1x128xf32>
    %c18 = arith.constant 18 : index
    %c0_81 = arith.constant 0 : index
    %84 = vector.load %arg11[%c18, %c0_81] : memref<64x128xf32, #tpu.memory_space<vmem>>, vector<1x128xf32>
    tpu.vector_store %arg11[%c18, %c0_81], %83 {strides = array<i32>} : memref<64x128xf32, #tpu.memory_space<vmem>>, vector<1x128xf32>,
    %c0_82 = arith.constant 0 : index
    %c3_83 = arith.constant 3 : index
    %85 = memref.load %arg1[%c0_82, %c3_83] : memref<2x8xi32, #tpu.memory_space<smem>>
    %86 = arith.index_cast %85 : i32 to index
    %c0_84 = arith.constant 0 : index
    %87 = vector.load %arg10[%86, %c0_84] : memref<50x128xf32, #tpu.memory_space<vmem>>, vector<1x128xf32>
    %c26 = arith.constant 26 : index
    %c0_85 = arith.constant 0 : index
    %88 = vector.load %arg11[%c26, %c0_85] : memref<64x128xf32, #tpu.memory_space<vmem>>, vector<1x128xf32>
    tpu.vector_store %arg11[%c26, %c0_85], %87 {strides = array<i32>} : memref<64x128xf32, #tpu.memory_space<vmem>>, vector<1x128xf32>,
    %c0_86 = arith.constant 0 : index
    %c4_87 = arith.constant 4 : index
    %89 = memref.load %arg1[%c0_86, %c4_87] : memref<2x8xi32, #tpu.memory_space<smem>>
    %90 = arith.index_cast %89 : i32 to index
    %c0_88 = arith.constant 0 : index
    %91 = vector.load %arg10[%90, %c0_88] : memref<50x128xf32, #tpu.memory_space<vmem>>, vector<1x128xf32>
    %c34 = arith.constant 34 : index
    %c0_89 = arith.constant 0 : index
    %92 = vector.load %arg11[%c34, %c0_89] : memref<64x128xf32, #tpu.memory_space<vmem>>, vector<1x128xf32>
    tpu.vector_store %arg11[%c34, %c0_89], %91 {strides = array<i32>} : memref<64x128xf32, #tpu.memory_space<vmem>>, vector<1x128xf32>,
    %c0_90 = arith.constant 0 : index
    %c5_91 = arith.constant 5 : index
    %93 = memref.load %arg1[%c0_90, %c5_91] : memref<2x8xi32, #tpu.memory_space<smem>>
    %94 = arith.index_cast %93 : i32 to index
    %c0_92 = arith.constant 0 : index
    %95 = vector.load %arg10[%94, %c0_92] : memref<50x128xf32, #tpu.memory_space<vmem>>, vector<1x128xf32>
    %c42 = arith.constant 42 : index
    %c0_93 = arith.constant 0 : index
    %96 = vector.load %arg11[%c42, %c0_93] : memref<64x128xf32, #tpu.memory_space<vmem>>, vector<1x128xf32>
    tpu.vector_store %arg11[%c42, %c0_93], %95 {strides = array<i32>} : memref<64x128xf32, #tpu.memory_space<vmem>>, vector<1x128xf32>,
    %c0_94 = arith.constant 0 : index
    %c6_95 = arith.constant 6 : index
    %97 = memref.load %arg1[%c0_94, %c6_95] : memref<2x8xi32, #tpu.memory_space<smem>>
    %98 = arith.index_cast %97 : i32 to index
    %c0_96 = arith.constant 0 : index
    %99 = vector.load %arg10[%98, %c0_96] : memref<50x128xf32, #tpu.memory_space<vmem>>, vector<1x128xf32>
    %c50 = arith.constant 50 : index
    %c0_97 = arith.constant 0 : index
    %100 = vector.load %arg11[%c50, %c0_97] : memref<64x128xf32, #tpu.memory_space<vmem>>, vector<1x128xf32>
    tpu.vector_store %arg11[%c50, %c0_97], %99 {strides = array<i32>} : memref<64x128xf32, #tpu.memory_space<vmem>>, vector<1x128xf32>,
    %c0_98 = arith.constant 0 : index
    %c7_99 = arith.constant 7 : index
    %101 = memref.load %arg1[%c0_98, %c7_99] : memref<2x8xi32, #tpu.memory_space<smem>>
    %102 = arith.index_cast %101 : i32 to index
    %c0_100 = arith.constant 0 : index
    %103 = vector.load %arg10[%102, %c0_100] : memref<50x128xf32, #tpu.memory_space<vmem>>, vector<1x128xf32>
    %c58 = arith.constant 58 : index
    %c0_101 = arith.constant 0 : index
    %104 = vector.load %arg11[%c58, %c0_101] : memref<64x128xf32, #tpu.memory_space<vmem>>, vector<1x128xf32>
    tpu.vector_store %arg11[%c58, %c0_101], %103 {strides = array<i32>} : memref<64x128xf32, #tpu.memory_space<vmem>>, vector<1x128xf32>,
    %c1_102 = arith.constant 1 : index
    %c0_103 = arith.constant 0 : index
    %105 = memref.load %arg1[%c1_102, %c0_103] : memref<2x8xi32, #tpu.memory_space<smem>>
    %106 = arith.index_cast %105 : i32 to index
    %c0_104 = arith.constant 0 : index
    %107 = vector.load %arg10[%106, %c0_104] : memref<50x128xf32, #tpu.memory_space<vmem>>, vector<1x128xf32>
    %c3_105 = arith.constant 3 : index
    %c0_106 = arith.constant 0 : index
    %108 = vector.load %arg11[%c3_105, %c0_106] : memref<64x128xf32, #tpu.memory_space<vmem>>, vector<1x128xf32>
    tpu.vector_store %arg11[%c3_105, %c0_106], %107 {strides = array<i32>} : memref<64x128xf32, #tpu.memory_space<vmem>>, vector<1x128xf32>,
    %c1_107 = arith.constant 1 : index
    %c1_108 = arith.constant 1 : index
    %109 = memref.load %arg1[%c1_107, %c1_108] : memref<2x8xi32, #tpu.memory_space<smem>>
    %110 = arith.index_cast %109 : i32 to index
    %c0_109 = arith.constant 0 : index
    %111 = vector.load %arg10[%110, %c0_109] : memref<50x128xf32, #tpu.memory_space<vmem>>, vector<1x128xf32>
    %c11 = arith.constant 11 : index
    %c0_110 = arith.constant 0 : index
    %112 = vector.load %arg11[%c11, %c0_110] : memref<64x128xf32, #tpu.memory_space<vmem>>, vector<1x128xf32>
    tpu.vector_store %arg11[%c11, %c0_110], %111 {strides = array<i32>} : memref<64x128xf32, #tpu.memory_space<vmem>>, vector<1x128xf32>,
    %c1_111 = arith.constant 1 : index
    %c2_112 = arith.constant 2 : index
    %113 = memref.load %arg1[%c1_111, %c2_112] : memref<2x8xi32, #tpu.memory_space<smem>>
    %114 = arith.index_cast %113 : i32 to index
    %c0_113 = arith.constant 0 : index
    %115 = vector.load %arg10[%114, %c0_113] : memref<50x128xf32, #tpu.memory_space<vmem>>, vector<1x128xf32>
    %c19 = arith.constant 19 : index
    %c0_114 = arith.constant 0 : index
    %116 = vector.load %arg11[%c19, %c0_114] : memref<64x128xf32, #tpu.memory_space<vmem>>, vector<1x128xf32>
    tpu.vector_store %arg11[%c19, %c0_114], %115 {strides = array<i32>} : memref<64x128xf32, #tpu.memory_space<vmem>>, vector<1x128xf32>,
    %c1_115 = arith.constant 1 : index
    %c3_116 = arith.constant 3 : index
    %117 = memref.load %arg1[%c1_115, %c3_116] : memref<2x8xi32, #tpu.memory_space<smem>>
    %118 = arith.index_cast %117 : i32 to index
    %c0_117 = arith.constant 0 : index
    %119 = vector.load %arg10[%118, %c0_117] : memref<50x128xf32, #tpu.memory_space<vmem>>, vector<1x128xf32>
    %c27 = arith.constant 27 : index
    %c0_118 = arith.constant 0 : index
    %120 = vector.load %arg11[%c27, %c0_118] : memref<64x128xf32, #tpu.memory_space<vmem>>, vector<1x128xf32>
    tpu.vector_store %arg11[%c27, %c0_118], %119 {strides = array<i32>} : memref<64x128xf32, #tpu.memory_space<vmem>>, vector<1x128xf32>,
    %c1_119 = arith.constant 1 : index
    %c4_120 = arith.constant 4 : index
    %121 = memref.load %arg1[%c1_119, %c4_120] : memref<2x8xi32, #tpu.memory_space<smem>>
    %122 = arith.index_cast %121 : i32 to index
    %c0_121 = arith.constant 0 : index
    %123 = vector.load %arg10[%122, %c0_121] : memref<50x128xf32, #tpu.memory_space<vmem>>, vector<1x128xf32>
    %c35 = arith.constant 35 : index
    %c0_122 = arith.constant 0 : index
    %124 = vector.load %arg11[%c35, %c0_122] : memref<64x128xf32, #tpu.memory_space<vmem>>, vector<1x128xf32>
    tpu.vector_store %arg11[%c35, %c0_122], %123 {strides = array<i32>} : memref<64x128xf32, #tpu.memory_space<vmem>>, vector<1x128xf32>,
    %c1_123 = arith.constant 1 : index
    %c5_124 = arith.constant 5 : index
    %125 = memref.load %arg1[%c1_123, %c5_124] : memref<2x8xi32, #tpu.memory_space<smem>>
    %126 = arith.index_cast %125 : i32 to index
    %c0_125 = arith.constant 0 : index
    %127 = vector.load %arg10[%126, %c0_125] : memref<50x128xf32, #tpu.memory_space<vmem>>, vector<1x128xf32>
    %c43 = arith.constant 43 : index
    %c0_126 = arith.constant 0 : index
    %128 = vector.load %arg11[%c43, %c0_126] : memref<64x128xf32, #tpu.memory_space<vmem>>, vector<1x128xf32>
    tpu.vector_store %arg11[%c43, %c0_126], %127 {strides = array<i32>} : memref<64x128xf32, #tpu.memory_space<vmem>>, vector<1x128xf32>,
    %c1_127 = arith.constant 1 : index
    %c6_128 = arith.constant 6 : index
    %129 = memref.load %arg1[%c1_127, %c6_128] : memref<2x8xi32, #tpu.memory_space<smem>>
    %130 = arith.index_cast %129 : i32 to index
    %c0_129 = arith.constant 0 : index
    %131 = vector.load %arg10[%130, %c0_129] : memref<50x128xf32, #tpu.memory_space<vmem>>, vector<1x128xf32>
    %c51 = arith.constant 51 : index
    %c0_130 = arith.constant 0 : index
    %132 = vector.load %arg11[%c51, %c0_130] : memref<64x128xf32, #tpu.memory_space<vmem>>, vector<1x128xf32>
    tpu.vector_store %arg11[%c51, %c0_130], %131 {strides = array<i32>} : memref<64x128xf32, #tpu.memory_space<vmem>>, vector<1x128xf32>,
    %c1_131 = arith.constant 1 : index
    %c7_132 = arith.constant 7 : index
    %133 = memref.load %arg1[%c1_131, %c7_132] : memref<2x8xi32, #tpu.memory_space<smem>>
    %134 = arith.index_cast %133 : i32 to index
    %c0_133 = arith.constant 0 : index
    %135 = vector.load %arg10[%134, %c0_133] : memref<50x128xf32, #tpu.memory_space<vmem>>, vector<1x128xf32>
    %c59 = arith.constant 59 : index
    %c0_134 = arith.constant 0 : index
    %136 = vector.load %arg11[%c59, %c0_134] : memref<64x128xf32, #tpu.memory_space<vmem>>, vector<1x128xf32>
    tpu.vector_store %arg11[%c59, %c0_134], %135 {strides = array<i32>} : memref<64x128xf32, #tpu.memory_space<vmem>>, vector<1x128xf32>,
    %137 = tpu.iota {dimensions = array<i32: 0>} : vector<8x32xi32>
    %c0_i32 = arith.constant 0 : i32
    %138 = vector.broadcast %c0_i32 : i32 to vector<8x32xi32>
    %c0_i32_135 = arith.constant 0 : i32
    %139 = vector.broadcast %c0_i32_135 : i32 to vector<8x32xi32>
    %140 = arith.cmpi eq, %137, %139 : vector<8x32xi32>
    %c0_136 = arith.constant 0 : index
    %141 = memref.load %arg2[%c0_136] : memref<2xi32, #tpu.memory_space<smem>>
    %142 = vector.broadcast %141 : i32 to vector<8x32xi32>
    %143 = arith.select %140, %142, %138 : vector<8x32xi1>, vector<8x32xi32>
    %c2_i32 = arith.constant 2 : i32
    %144 = vector.broadcast %c2_i32 : i32 to vector<8x32xi32>
    %145 = arith.cmpi eq, %137, %144 : vector<8x32xi32>
    %c0_137 = arith.constant 0 : index
    %146 = memref.load %arg3[%c0_137] : memref<2xi32, #tpu.memory_space<smem>>
    %147 = vector.broadcast %146 : i32 to vector<8x32xi32>
    %148 = arith.select %145, %147, %143 : vector<8x32xi1>, vector<8x32xi32>
    %c1_i32 = arith.constant 1 : i32
    %149 = vector.broadcast %c1_i32 : i32 to vector<8x32xi32>
    %150 = arith.cmpi eq, %137, %149 : vector<8x32xi32>
    %c1_138 = arith.constant 1 : index
    %151 = memref.load %arg2[%c1_138] : memref<2xi32, #tpu.memory_space<smem>>
    %152 = vector.broadcast %151 : i32 to vector<8x32xi32>
    %153 = arith.select %150, %152, %148 : vector<8x32xi1>, vector<8x32xi32>
    %c3_i32 = arith.constant 3 : i32
    %154 = vector.broadcast %c3_i32 : i32 to vector<8x32xi32>
    %155 = arith.cmpi eq, %137, %154 : vector<8x32xi32>
    %c1_139 = arith.constant 1 : index
    %156 = memref.load %arg3[%c1_139] : memref<2xi32, #tpu.memory_space<smem>>
    %157 = vector.broadcast %156 : i32 to vector<8x32xi32>
    %158 = arith.select %155, %157, %153 : vector<8x32xi1>, vector<8x32xi32>
    %c0_140 = arith.constant 0 : index
    %c0_141 = arith.constant 0 : index
    %159 = vector.load %arg6[%c0_140, %c0_141] : memref<32x128xbf16, #tpu.memory_space<vmem>>, vector<32x128xbf16>
    %cst_142 = arith.constant 0.000000e+00 : f32
    %160 = vector.broadcast %cst_142 : f32 to vector<8x32xf32>
    %cst_143 = arith.constant 0.000000e+00 : f32
    %161 = vector.broadcast %cst_143 : f32 to vector<8x32xf32>
    %c0_144 = arith.constant 0 : index
    %c0_145 = arith.constant 0 : index
    %162 = vector.load %arg11[%c0_144, %c0_145] : memref<64x128xf32, #tpu.memory_space<vmem>>, vector<8x128xf32>
    %163 = arith.truncf %160 : vector<8x32xf32> to vector<8x32xbf16>
    %cst_146 = arith.constant dense<0.000000e+00> : vector<8x128xf32>
    %164 = tpu.matmul %163, %159, %cst_146 {dimension_numbers = #tpu.dot_dimension_numbers<[1], [0], [0], [1], [0, 0, 1, 1], [], []>} : vector<8x32xbf16>, vector<32x128xbf16>, vector<8x128xf32> -> vector<8x128xf32>
    %165 = arith.addf %162, %164 : vector<8x128xf32>
    %166 = arith.negf %165 : vector<8x128xf32>
    %167 = math.exp %166 : vector<8x128xf32>
    %cst_147 = arith.constant 1.000000e+00 : f32
    %168 = vector.broadcast %cst_147 : f32 to vector<8x128xf32>
    %169 = arith.addf %168, %167 : vector<8x128xf32>
    %170 = arith.divf %168, %169 : vector<8x128xf32>
    %171 = vector.extract_strided_slice %170 {offsets = [0, 0], sizes = [8, 32], strides = [1, 1]} : vector<8x128xf32> to vector<8x32xf32>
    %172 = vector.extract_strided_slice %170 {offsets = [0, 32], sizes = [8, 32], strides = [1, 1]} : vector<8x128xf32> to vector<8x32xf32>
    %173 = vector.extract_strided_slice %170 {offsets = [0, 64], sizes = [8, 32], strides = [1, 1]} : vector<8x128xf32> to vector<8x32xf32>
    %cst_148 = arith.constant 2.000000e+00 : f32
    %174 = vector.broadcast %cst_148 : f32 to vector<8x32xf32>
    %175 = arith.mulf %174, %173 : vector<8x32xf32>
    %cst_149 = arith.constant 1.000000e+00 : f32
    %176 = vector.broadcast %cst_149 : f32 to vector<8x32xf32>
    %177 = arith.subf %175, %176 : vector<8x32xf32>
    %178 = vector.extract_strided_slice %170 {offsets = [0, 96], sizes = [8, 32], strides = [1, 1]} : vector<8x128xf32> to vector<8x32xf32>
    %179 = arith.mulf %172, %161 : vector<8x32xf32>
    %180 = arith.mulf %171, %177 : vector<8x32xf32>
    %181 = arith.addf %179, %180 : vector<8x32xf32>
    %182 = math.tanh %181 : vector<8x32xf32>
    %183 = arith.mulf %178, %182 : vector<8x32xf32>
    %c0_i32_150 = arith.constant 0 : i32
    %184 = vector.broadcast %c0_i32_150 : i32 to vector<8x32xi32>
    %185 = arith.cmpi sgt, %158, %184 : vector<8x32xi32>
    %186 = arith.select %185, %183, %160 : vector<8x32xi1>, vector<8x32xf32>
    %187 = arith.select %185, %181, %161 : vector<8x32xi1>, vector<8x32xf32>
    %c8_151 = arith.constant 8 : index
    %c0_152 = arith.constant 0 : index
    %188 = vector.load %arg11[%c8_151, %c0_152] : memref<64x128xf32, #tpu.memory_space<vmem>>, vector<8x128xf32>
    %189 = arith.truncf %186 : vector<8x32xf32> to vector<8x32xbf16>
    %cst_153 = arith.constant dense<0.000000e+00> : vector<8x128xf32>
    %190 = tpu.matmul %189, %159, %cst_153 {dimension_numbers = #tpu.dot_dimension_numbers<[1], [0], [0], [1], [0, 0, 1, 1], [], []>} : vector<8x32xbf16>, vector<32x128xbf16>, vector<8x128xf32> -> vector<8x128xf32>
    %191 = arith.addf %188, %190 : vector<8x128xf32>
    %192 = arith.negf %191 : vector<8x128xf32>
    %193 = math.exp %192 : vector<8x128xf32>
    %cst_154 = arith.constant 1.000000e+00 : f32
    %194 = vector.broadcast %cst_154 : f32 to vector<8x128xf32>
    %195 = arith.addf %194, %193 : vector<8x128xf32>
    %196 = arith.divf %194, %195 : vector<8x128xf32>
    %197 = vector.extract_strided_slice %196 {offsets = [0, 0], sizes = [8, 32], strides = [1, 1]} : vector<8x128xf32> to vector<8x32xf32>
    %198 = vector.extract_strided_slice %196 {offsets = [0, 32], sizes = [8, 32], strides = [1, 1]} : vector<8x128xf32> to vector<8x32xf32>
    %199 = vector.extract_strided_slice %196 {offsets = [0, 64], sizes = [8, 32], strides = [1, 1]} : vector<8x128xf32> to vector<8x32xf32>
    %cst_155 = arith.constant 2.000000e+00 : f32
    %200 = vector.broadcast %cst_155 : f32 to vector<8x32xf32>
    %201 = arith.mulf %200, %199 : vector<8x32xf32>
    %cst_156 = arith.constant 1.000000e+00 : f32
    %202 = vector.broadcast %cst_156 : f32 to vector<8x32xf32>
    %203 = arith.subf %201, %202 : vector<8x32xf32>
    %204 = vector.extract_strided_slice %196 {offsets = [0, 96], sizes = [8, 32], strides = [1, 1]} : vector<8x128xf32> to vector<8x32xf32>
    %205 = arith.mulf %198, %187 : vector<8x32xf32>
    %206 = arith.mulf %197, %203 : vector<8x32xf32>
    %207 = arith.addf %205, %206 : vector<8x32xf32>
    %208 = math.tanh %207 : vector<8x32xf32>
    %209 = arith.mulf %204, %208 : vector<8x32xf32>
    %c1_i32_157 = arith.constant 1 : i32
    %210 = vector.broadcast %c1_i32_157 : i32 to vector<8x32xi32>
    %211 = arith.cmpi sgt, %158, %210 : vector<8x32xi32>
    %212 = arith.select %211, %209, %186 : vector<8x32xi1>, vector<8x32xf32>
    %213 = arith.select %211, %207, %187 : vector<8x32xi1>, vector<8x32xf32>
    %c16_158 = arith.constant 16 : index
    %c0_159 = arith.constant 0 : index
    %214 = vector.load %arg11[%c16_158, %c0_159] : memref<64x128xf32, #tpu.memory_space<vmem>>, vector<8x128xf32>
    %215 = arith.truncf %212 : vector<8x32xf32> to vector<8x32xbf16>
    %cst_160 = arith.constant dense<0.000000e+00> : vector<8x128xf32>
    %216 = tpu.matmul %215, %159, %cst_160 {dimension_numbers = #tpu.dot_dimension_numbers<[1], [0], [0], [1], [0, 0, 1, 1], [], []>} : vector<8x32xbf16>, vector<32x128xbf16>, vector<8x128xf32> -> vector<8x128xf32>
    %217 = arith.addf %214, %216 : vector<8x128xf32>
    %218 = arith.negf %217 : vector<8x128xf32>
    %219 = math.exp %218 : vector<8x128xf32>
    %cst_161 = arith.constant 1.000000e+00 : f32
    %220 = vector.broadcast %cst_161 : f32 to vector<8x128xf32>
    %221 = arith.addf %220, %219 : vector<8x128xf32>
    %222 = arith.divf %220, %221 : vector<8x128xf32>
    %223 = vector.extract_strided_slice %222 {offsets = [0, 0], sizes = [8, 32], strides = [1, 1]} : vector<8x128xf32> to vector<8x32xf32>
    %224 = vector.extract_strided_slice %222 {offsets = [0, 32], sizes = [8, 32], strides = [1, 1]} : vector<8x128xf32> to vector<8x32xf32>
    %225 = vector.extract_strided_slice %222 {offsets = [0, 64], sizes = [8, 32], strides = [1, 1]} : vector<8x128xf32> to vector<8x32xf32>
    %cst_162 = arith.constant 2.000000e+00 : f32
    %226 = vector.broadcast %cst_162 : f32 to vector<8x32xf32>
    %227 = arith.mulf %226, %225 : vector<8x32xf32>
    %cst_163 = arith.constant 1.000000e+00 : f32
    %228 = vector.broadcast %cst_163 : f32 to vector<8x32xf32>
    %229 = arith.subf %227, %228 : vector<8x32xf32>
    %230 = vector.extract_strided_slice %222 {offsets = [0, 96], sizes = [8, 32], strides = [1, 1]} : vector<8x128xf32> to vector<8x32xf32>
    %231 = arith.mulf %224, %213 : vector<8x32xf32>
    %232 = arith.mulf %223, %229 : vector<8x32xf32>
    %233 = arith.addf %231, %232 : vector<8x32xf32>
    %234 = math.tanh %233 : vector<8x32xf32>
    %235 = arith.mulf %230, %234 : vector<8x32xf32>
    %c2_i32_164 = arith.constant 2 : i32
    %236 = vector.broadcast %c2_i32_164 : i32 to vector<8x32xi32>
    %237 = arith.cmpi sgt, %158, %236 : vector<8x32xi32>
    %238 = arith.select %237, %235, %212 : vector<8x32xi1>, vector<8x32xf32>
    %239 = arith.select %237, %233, %213 : vector<8x32xi1>, vector<8x32xf32>
    %c24_165 = arith.constant 24 : index
    %c0_166 = arith.constant 0 : index
    %240 = vector.load %arg11[%c24_165, %c0_166] : memref<64x128xf32, #tpu.memory_space<vmem>>, vector<8x128xf32>
    %241 = arith.truncf %238 : vector<8x32xf32> to vector<8x32xbf16>
    %cst_167 = arith.constant dense<0.000000e+00> : vector<8x128xf32>
    %242 = tpu.matmul %241, %159, %cst_167 {dimension_numbers = #tpu.dot_dimension_numbers<[1], [0], [0], [1], [0, 0, 1, 1], [], []>} : vector<8x32xbf16>, vector<32x128xbf16>, vector<8x128xf32> -> vector<8x128xf32>
    %243 = arith.addf %240, %242 : vector<8x128xf32>
    %244 = arith.negf %243 : vector<8x128xf32>
    %245 = math.exp %244 : vector<8x128xf32>
    %cst_168 = arith.constant 1.000000e+00 : f32
    %246 = vector.broadcast %cst_168 : f32 to vector<8x128xf32>
    %247 = arith.addf %246, %245 : vector<8x128xf32>
    %248 = arith.divf %246, %247 : vector<8x128xf32>
    %249 = vector.extract_strided_slice %248 {offsets = [0, 0], sizes = [8, 32], strides = [1, 1]} : vector<8x128xf32> to vector<8x32xf32>
    %250 = vector.extract_strided_slice %248 {offsets = [0, 32], sizes = [8, 32], strides = [1, 1]} : vector<8x128xf32> to vector<8x32xf32>
    %251 = vector.extract_strided_slice %248 {offsets = [0, 64], sizes = [8, 32], strides = [1, 1]} : vector<8x128xf32> to vector<8x32xf32>
    %cst_169 = arith.constant 2.000000e+00 : f32
    %252 = vector.broadcast %cst_169 : f32 to vector<8x32xf32>
    %253 = arith.mulf %252, %251 : vector<8x32xf32>
    %cst_170 = arith.constant 1.000000e+00 : f32
    %254 = vector.broadcast %cst_170 : f32 to vector<8x32xf32>
    %255 = arith.subf %253, %254 : vector<8x32xf32>
    %256 = vector.extract_strided_slice %248 {offsets = [0, 96], sizes = [8, 32], strides = [1, 1]} : vector<8x128xf32> to vector<8x32xf32>
    %257 = arith.mulf %250, %239 : vector<8x32xf32>
    %258 = arith.mulf %249, %255 : vector<8x32xf32>
    %259 = arith.addf %257, %258 : vector<8x32xf32>
    %260 = math.tanh %259 : vector<8x32xf32>
    %261 = arith.mulf %256, %260 : vector<8x32xf32>
    %c3_i32_171 = arith.constant 3 : i32
    %262 = vector.broadcast %c3_i32_171 : i32 to vector<8x32xi32>
    %263 = arith.cmpi sgt, %158, %262 : vector<8x32xi32>
    %264 = arith.select %263, %261, %238 : vector<8x32xi1>, vector<8x32xf32>
    %265 = arith.select %263, %259, %239 : vector<8x32xi1>, vector<8x32xf32>
    %c32_172 = arith.constant 32 : index
    %c0_173 = arith.constant 0 : index
    %266 = vector.load %arg11[%c32_172, %c0_173] : memref<64x128xf32, #tpu.memory_space<vmem>>, vector<8x128xf32>
    %267 = arith.truncf %264 : vector<8x32xf32> to vector<8x32xbf16>
    %cst_174 = arith.constant dense<0.000000e+00> : vector<8x128xf32>
    %268 = tpu.matmul %267, %159, %cst_174 {dimension_numbers = #tpu.dot_dimension_numbers<[1], [0], [0], [1], [0, 0, 1, 1], [], []>} : vector<8x32xbf16>, vector<32x128xbf16>, vector<8x128xf32> -> vector<8x128xf32>
    %269 = arith.addf %266, %268 : vector<8x128xf32>
    %270 = arith.negf %269 : vector<8x128xf32>
    %271 = math.exp %270 : vector<8x128xf32>
    %cst_175 = arith.constant 1.000000e+00 : f32
    %272 = vector.broadcast %cst_175 : f32 to vector<8x128xf32>
    %273 = arith.addf %272, %271 : vector<8x128xf32>
    %274 = arith.divf %272, %273 : vector<8x128xf32>
    %275 = vector.extract_strided_slice %274 {offsets = [0, 0], sizes = [8, 32], strides = [1, 1]} : vector<8x128xf32> to vector<8x32xf32>
    %276 = vector.extract_strided_slice %274 {offsets = [0, 32], sizes = [8, 32], strides = [1, 1]} : vector<8x128xf32> to vector<8x32xf32>
    %277 = vector.extract_strided_slice %274 {offsets = [0, 64], sizes = [8, 32], strides = [1, 1]} : vector<8x128xf32> to vector<8x32xf32>
    %cst_176 = arith.constant 2.000000e+00 : f32
    %278 = vector.broadcast %cst_176 : f32 to vector<8x32xf32>
    %279 = arith.mulf %278, %277 : vector<8x32xf32>
    %cst_177 = arith.constant 1.000000e+00 : f32
    %280 = vector.broadcast %cst_177 : f32 to vector<8x32xf32>
    %281 = arith.subf %279, %280 : vector<8x32xf32>
    %282 = vector.extract_strided_slice %274 {offsets = [0, 96], sizes = [8, 32], strides = [1, 1]} : vector<8x128xf32> to vector<8x32xf32>
    %283 = arith.mulf %276, %265 : vector<8x32xf32>
    %284 = arith.mulf %275, %281 : vector<8x32xf32>
    %285 = arith.addf %283, %284 : vector<8x32xf32>
    %286 = math.tanh %285 : vector<8x32xf32>
    %287 = arith.mulf %282, %286 : vector<8x32xf32>
    %c4_i32 = arith.constant 4 : i32
    %288 = vector.broadcast %c4_i32 : i32 to vector<8x32xi32>
    %289 = arith.cmpi sgt, %158, %288 : vector<8x32xi32>
    %290 = arith.select %289, %287, %264 : vector<8x32xi1>, vector<8x32xf32>
    %291 = arith.select %289, %285, %265 : vector<8x32xi1>, vector<8x32xf32>
    %c40_178 = arith.constant 40 : index
    %c0_179 = arith.constant 0 : index
    %292 = vector.load %arg11[%c40_178, %c0_179] : memref<64x128xf32, #tpu.memory_space<vmem>>, vector<8x128xf32>
    %293 = arith.truncf %290 : vector<8x32xf32> to vector<8x32xbf16>
    %cst_180 = arith.constant dense<0.000000e+00> : vector<8x128xf32>
    %294 = tpu.matmul %293, %159, %cst_180 {dimension_numbers = #tpu.dot_dimension_numbers<[1], [0], [0], [1], [0, 0, 1, 1], [], []>} : vector<8x32xbf16>, vector<32x128xbf16>, vector<8x128xf32> -> vector<8x128xf32>
    %295 = arith.addf %292, %294 : vector<8x128xf32>
    %296 = arith.negf %295 : vector<8x128xf32>
    %297 = math.exp %296 : vector<8x128xf32>
    %cst_181 = arith.constant 1.000000e+00 : f32
    %298 = vector.broadcast %cst_181 : f32 to vector<8x128xf32>
    %299 = arith.addf %298, %297 : vector<8x128xf32>
    %300 = arith.divf %298, %299 : vector<8x128xf32>
    %301 = vector.extract_strided_slice %300 {offsets = [0, 0], sizes = [8, 32], strides = [1, 1]} : vector<8x128xf32> to vector<8x32xf32>
    %302 = vector.extract_strided_slice %300 {offsets = [0, 32], sizes = [8, 32], strides = [1, 1]} : vector<8x128xf32> to vector<8x32xf32>
    %303 = vector.extract_strided_slice %300 {offsets = [0, 64], sizes = [8, 32], strides = [1, 1]} : vector<8x128xf32> to vector<8x32xf32>
    %cst_182 = arith.constant 2.000000e+00 : f32
    %304 = vector.broadcast %cst_182 : f32 to vector<8x32xf32>
    %305 = arith.mulf %304, %303 : vector<8x32xf32>
    %cst_183 = arith.constant 1.000000e+00 : f32
    %306 = vector.broadcast %cst_183 : f32 to vector<8x32xf32>
    %307 = arith.subf %305, %306 : vector<8x32xf32>
    %308 = vector.extract_strided_slice %300 {offsets = [0, 96], sizes = [8, 32], strides = [1, 1]} : vector<8x128xf32> to vector<8x32xf32>
    %309 = arith.mulf %302, %291 : vector<8x32xf32>
    %310 = arith.mulf %301, %307 : vector<8x32xf32>
    %311 = arith.addf %309, %310 : vector<8x32xf32>
    %312 = math.tanh %311 : vector<8x32xf32>
    %313 = arith.mulf %308, %312 : vector<8x32xf32>
    %c5_i32 = arith.constant 5 : i32
    %314 = vector.broadcast %c5_i32 : i32 to vector<8x32xi32>
    %315 = arith.cmpi sgt, %158, %314 : vector<8x32xi32>
    %316 = arith.select %315, %313, %290 : vector<8x32xi1>, vector<8x32xf32>
    %317 = arith.select %315, %311, %291 : vector<8x32xi1>, vector<8x32xf32>
    %c48_184 = arith.constant 48 : index
    %c0_185 = arith.constant 0 : index
    %318 = vector.load %arg11[%c48_184, %c0_185] : memref<64x128xf32, #tpu.memory_space<vmem>>, vector<8x128xf32>
    %319 = arith.truncf %316 : vector<8x32xf32> to vector<8x32xbf16>
    %cst_186 = arith.constant dense<0.000000e+00> : vector<8x128xf32>
    %320 = tpu.matmul %319, %159, %cst_186 {dimension_numbers = #tpu.dot_dimension_numbers<[1], [0], [0], [1], [0, 0, 1, 1], [], []>} : vector<8x32xbf16>, vector<32x128xbf16>, vector<8x128xf32> -> vector<8x128xf32>
    %321 = arith.addf %318, %320 : vector<8x128xf32>
    %322 = arith.negf %321 : vector<8x128xf32>
    %323 = math.exp %322 : vector<8x128xf32>
    %cst_187 = arith.constant 1.000000e+00 : f32
    %324 = vector.broadcast %cst_187 : f32 to vector<8x128xf32>
    %325 = arith.addf %324, %323 : vector<8x128xf32>
    %326 = arith.divf %324, %325 : vector<8x128xf32>
    %327 = vector.extract_strided_slice %326 {offsets = [0, 0], sizes = [8, 32], strides = [1, 1]} : vector<8x128xf32> to vector<8x32xf32>
    %328 = vector.extract_strided_slice %326 {offsets = [0, 32], sizes = [8, 32], strides = [1, 1]} : vector<8x128xf32> to vector<8x32xf32>
    %329 = vector.extract_strided_slice %326 {offsets = [0, 64], sizes = [8, 32], strides = [1, 1]} : vector<8x128xf32> to vector<8x32xf32>
    %cst_188 = arith.constant 2.000000e+00 : f32
    %330 = vector.broadcast %cst_188 : f32 to vector<8x32xf32>
    %331 = arith.mulf %330, %329 : vector<8x32xf32>
    %cst_189 = arith.constant 1.000000e+00 : f32
    %332 = vector.broadcast %cst_189 : f32 to vector<8x32xf32>
    %333 = arith.subf %331, %332 : vector<8x32xf32>
    %334 = vector.extract_strided_slice %326 {offsets = [0, 96], sizes = [8, 32], strides = [1, 1]} : vector<8x128xf32> to vector<8x32xf32>
    %335 = arith.mulf %328, %317 : vector<8x32xf32>
    %336 = arith.mulf %327, %333 : vector<8x32xf32>
    %337 = arith.addf %335, %336 : vector<8x32xf32>
    %338 = math.tanh %337 : vector<8x32xf32>
    %339 = arith.mulf %334, %338 : vector<8x32xf32>
    %c6_i32 = arith.constant 6 : i32
    %340 = vector.broadcast %c6_i32 : i32 to vector<8x32xi32>
    %341 = arith.cmpi sgt, %158, %340 : vector<8x32xi32>
    %342 = arith.select %341, %339, %316 : vector<8x32xi1>, vector<8x32xf32>
    %343 = arith.select %341, %337, %317 : vector<8x32xi1>, vector<8x32xf32>
    %c56_190 = arith.constant 56 : index
    %c0_191 = arith.constant 0 : index
    %344 = vector.load %arg11[%c56_190, %c0_191] : memref<64x128xf32, #tpu.memory_space<vmem>>, vector<8x128xf32>
    %345 = arith.truncf %342 : vector<8x32xf32> to vector<8x32xbf16>
    %cst_192 = arith.constant dense<0.000000e+00> : vector<8x128xf32>
    %346 = tpu.matmul %345, %159, %cst_192 {dimension_numbers = #tpu.dot_dimension_numbers<[1], [0], [0], [1], [0, 0, 1, 1], [], []>} : vector<8x32xbf16>, vector<32x128xbf16>, vector<8x128xf32> -> vector<8x128xf32>
    %347 = arith.addf %344, %346 : vector<8x128xf32>
    %348 = arith.negf %347 : vector<8x128xf32>
    %349 = math.exp %348 : vector<8x128xf32>
    %cst_193 = arith.constant 1.000000e+00 : f32
    %350 = vector.broadcast %cst_193 : f32 to vector<8x128xf32>
    %351 = arith.addf %350, %349 : vector<8x128xf32>
    %352 = arith.divf %350, %351 : vector<8x128xf32>
    %353 = vector.extract_strided_slice %352 {offsets = [0, 0], sizes = [8, 32], strides = [1, 1]} : vector<8x128xf32> to vector<8x32xf32>
    %354 = vector.extract_strided_slice %352 {offsets = [0, 32], sizes = [8, 32], strides = [1, 1]} : vector<8x128xf32> to vector<8x32xf32>
    %355 = vector.extract_strided_slice %352 {offsets = [0, 64], sizes = [8, 32], strides = [1, 1]} : vector<8x128xf32> to vector<8x32xf32>
    %cst_194 = arith.constant 2.000000e+00 : f32
    %356 = vector.broadcast %cst_194 : f32 to vector<8x32xf32>
    %357 = arith.mulf %356, %355 : vector<8x32xf32>
    %cst_195 = arith.constant 1.000000e+00 : f32
    %358 = vector.broadcast %cst_195 : f32 to vector<8x32xf32>
    %359 = arith.subf %357, %358 : vector<8x32xf32>
    %360 = vector.extract_strided_slice %352 {offsets = [0, 96], sizes = [8, 32], strides = [1, 1]} : vector<8x128xf32> to vector<8x32xf32>
    %361 = arith.mulf %354, %343 : vector<8x32xf32>
    %362 = arith.mulf %353, %359 : vector<8x32xf32>
    %363 = arith.addf %361, %362 : vector<8x32xf32>
    %364 = math.tanh %363 : vector<8x32xf32>
    %365 = arith.mulf %360, %364 : vector<8x32xf32>
    %c7_i32 = arith.constant 7 : i32
    %366 = vector.broadcast %c7_i32 : i32 to vector<8x32xi32>
    %367 = arith.cmpi sgt, %158, %366 : vector<8x32xi32>
    %368 = arith.select %367, %365, %342 : vector<8x32xi1>, vector<8x32xf32>
    %369 = vector.extract_strided_slice %368 {offsets = [0, 0], sizes = [2, 32], strides = [1, 1]} : vector<8x32xf32> to vector<2x32xf32>
    %c0_196 = arith.constant 0 : index
    %c0_197 = arith.constant 0 : index
    %370 = vector.load %arg8[%c0_196, %c0_197] : memref<2x32xf32, #tpu.memory_space<vmem>>, vector<2x32xf32>
    tpu.vector_store %arg8[%c0_196, %c0_197], %369 {strides = array<i32>} : memref<2x32xf32, #tpu.memory_space<vmem>>, vector<2x32xf32>,
    %371 = vector.extract_strided_slice %368 {offsets = [2, 0], sizes = [2, 32], strides = [1, 1]} : vector<8x32xf32> to vector<2x32xf32>
    %c0_198 = arith.constant 0 : index
    %c0_199 = arith.constant 0 : index
    %372 = vector.load %arg9[%c0_198, %c0_199] : memref<2x32xf32, #tpu.memory_space<vmem>>, vector<2x32xf32>
    tpu.vector_store %arg9[%c0_198, %c0_199], %371 {strides = array<i32>} : memref<2x32xf32, #tpu.memory_space<vmem>>, vector<2x32xf32>,
    return
  }
}

</mosaic_0001>

<bundles_post_ra>
// kernel: siamese_forward.1
= control target key start
LH: loop header
LB: loop body
LE: loop exit
PB: predicated region body
PF: predicated region fallthrough
CT: control target
= control target key end

     0   :  { %s1773_s0 = inlined_call_operand.vmem [shape: s32[2,8], index: 0, kind: input, shape index: {}]   ;;  %s1774_s1 = inlined_call_operand.vmem [shape: s32[2,8], index: 1, kind: input, shape index: {}]   ;;  %s1775_s2 = inlined_call_operand.vmem [shape: s32[2], index: 2, kind: input, shape index: {}]   ;;  %s1776_s3 = inlined_call_operand.vmem [shape: s32[2], index: 3, kind: input, shape index: {}]   ;;  %s1777_s4 = inlined_call_operand.vmem [shape: bf16[50,32], index: 4, kind: input, shape index: {}]   ;;  %s1778_s5 = inlined_call_operand.vmem [shape: bf16[32,128], index: 5, kind: input, shape index: {}]   ;;  %s1779_s6 = inlined_call_operand.vmem [shape: bf16[32,128], index: 6, kind: input, shape index: {}]   ;;  %s1780_s7 = inlined_call_operand.vmem [shape: f32[1,128], index: 7, kind: input, shape index: {}]   ;;  %s1781_s8 = inlined_call_operand.hbm [shape: f32[2,32], index: 8, kind: output, shape index: {0}]   ;;  %s1782_s9 = inlined_call_operand.hbm [shape: f32[2,32], index: 9, kind: output, shape index: {1}]  }
   0x1   :  { %1785 = sst [smem:[#allocation27_spill]] %s1781_s8 }
   0x2   :  { %1786 = sst [smem:[#allocation28_spill]] %s1782_s9 }
   0x3   :  { %15 = vsyncpa [#allocation6], 0 }
   0x4   :  { %16 = vsyncpa [#allocation8], 0 }
   0x5   :  { %17 = vsyncpa [#allocation11], 0 }
   0x6   :  { %18 = vsyncpa [#allocation5], 0  ;;  %s36_s11 = sshll.u32 %s1774_s1, 4  ;;  %s37_s11 = int_to_ptr.vmem [resolvable:$true] %s36_s11 }
   0x7   :  { %19 = vsyncpa [#allocation14], 0  ;;  %s26_s14 = sshll.u32 %s1773_s0, 4  ;;  %s1307_s15 = scalar_lea.vmem %s37_s11, 32  ;;  %s27_s14 = int_to_ptr.vmem [resolvable:$true] %s26_s14 }
   0x8   :  { %p1308_p0 = scmp.ne.s32.totalorder %s37_s11, %s1307_s15  ;;  %p1312_p1 = scmp.lt.s32.totalorder %s37_s11, %s37_s11 }
   0x9   :  { %p1313_p2 = scmp.lt.s32.totalorder %s1307_s15, %s1307_s15 }
   0xb   :  { %p1314_p3 = por %p1313_p2, %p1312_p1 }
   0xd   :  { %p1315_p4 = pnand %p1314_p3, %p1308_p0 }
   0xf   :  { %1318 = shalt.err (!%p1315_p4)
}
  0x10   :  { %s1409_s16 = smov [#allocation7]   ;;  %s1319_s17 = scalar_lea.vmem %s27_s14, 32 }
  0x11   :  { %39 = dma.vmem_to_smem %s37_s11, 32, %s1409_s16, [#allocation8]  }
  0x12   :  { %p1320_p5 = scmp.ne.s32.totalorder %s27_s14, %s1319_s17  ;;  %p1324_p6 = scmp.lt.s32.totalorder %s27_s14, %s27_s14 }
  0x13   :  { %p1325_p7 = scmp.lt.s32.totalorder %s1319_s17, %s1319_s17 }
  0x15   :  { %p1326_p8 = por %p1325_p7, %p1324_p6 }
  0x17   :  { %p1327_p9 = pnand %p1326_p8, %p1320_p5 }
  0x19   :  { %1330 = shalt.err (!%p1327_p9)
}
  0x1a   :  { %s1410_s1 = smov [#allocation4]   ;;  %s46_s19 = sshll.u32 %s1775_s2, 4  ;;  %s47_s19 = int_to_ptr.vmem [resolvable:$true] %s46_s19 }
  0x1b   :  { %29 = dma.vmem_to_smem %s27_s14, 32, %s1410_s1, [#allocation6]  }
  0x1c   :  { %s56_s22 = sshll.u32 %s1776_s3, 4  ;;  %s1331_s23 = scalar_lea.vmem %s47_s19, 16  ;;  %s57_s22 = int_to_ptr.vmem [resolvable:$true] %s56_s22 }
  0x1d   :  { %p1332_p10 = scmp.ne.s32.totalorder %s47_s19, %s1331_s23  ;;  %p1336_p11 = scmp.lt.s32.totalorder %s47_s19, %s47_s19 }
  0x1e   :  { %p1337_p12 = scmp.lt.s32.totalorder %s1331_s23, %s1331_s23 }
  0x20   :  { %p1338_p13 = por %p1337_p12, %p1336_p11 }
  0x22   :  { %p1339_p0 = pnand %p1338_p13, %p1332_p10 }
  0x24   :  { %1342 = shalt.err (!%p1339_p0)
}
  0x25   :  { %s1411_s24 = smov [#allocation9]   ;;  %s1343_s25 = scalar_lea.vmem %s57_s22, 16 }
  0x26   :  { %49 = dma.vmem_to_smem %s47_s19, 16, %s1411_s24, [#allocation8]  }
  0x27   :  { %p1344_p1 = scmp.ne.s32.totalorder %s57_s22, %s1343_s25  ;;  %p1348_p2 = scmp.lt.s32.totalorder %s57_s22, %s57_s22 }
  0x28   :  { %p1349_p3 = scmp.lt.s32.totalorder %s1343_s25, %s1343_s25 }
  0x2a   :  { %p1350_p4 = por %p1349_p3, %p1348_p2 }
  0x2c   :  { %p1351_p5 = pnand %p1350_p4, %p1344_p1 }
  0x2e   :  { %1354 = shalt.err (!%p1351_p5)
}
  0x2f   :  { %s1412_s2 = smov [#allocation10]  }
  0x30   :  { %59 = dma.vmem_to_smem %s57_s22, 16, %s1412_s2, [#allocation11]  }
  0x31   :  { %1399 = dma.done.wait [#allocation6], 32  }
  0x32   :  { %1400 = vsyncadd [#allocation6], 4294967264 }
  0x33   :  { %1401 = dma.done.wait [#allocation8], 48  }
  0x34   :  { %1402 = vsyncadd [#allocation8], 4294967248 }
  0x35   :  { %1403 = dma.done.wait [#allocation11], 16  }
  0x36   :  { %1404 = vsyncadd [#allocation11], 4294967280 }
  0x37   :  { %80 = sfence }
  0x38   :  { %v1251_v0 = vld [vmem:[%s1778_s5] sm:$0xff]   ;;  %vm130_vm0 = vcmask 261120   ;;  %v1252_v1 = vld [vmem:[%s1778_s5 + $0x8] sm:$0xff]   ;;  %v1413_v3 = vmov 0.0   ;;  %vm1414_vm1 = vmmov 0   ;;  %v1255_v6 = vld [vmem:[%s1777_s4 + $0x10] sm:$0xff]  }
  0x39   :  { %1164 = vmatprep.subr.bf16.mxu0 %v1251_v0  ;;  %v1253_v2 = vld [vmem:[%s1777_s4] sm:$0xff]   ;;  %1176 = vmatprep.subr.bf16.mxu1 %v1413_v3  ;;  %214 = vst [vmem:[#allocation3] sm:$0xff] %v1413_v3  ;;  %215 = vst [vmem:[#allocation3 + $0x8] sm:$0xff] %v1413_v3  ;;  %v1254_v4 = vld [vmem:[%s1777_s4 + $0x8] sm:$0xff]   ;;  %v1415_v9 = vmov 0   ;;  %s1546_s0 = sld [smem:[#allocation7]] }
  0x3a   :  { %216 = vst [vmem:[#allocation3 + $0x10] sm:$0xff] %v1413_v3  ;;  %217 = vst [vmem:[#allocation3 + $0x18] sm:$0xff] %v1413_v3  ;;  %1165 = vmatpush3.bf16.msra.mxu0 %v1251_v0  ;;  %1180 = vmatprep.mubr.msk.bf16.mxu1 %vm1414_vm1, %v1413_v3  ;;  %v1509_v5 = vld [vmem:[%s1779_s6] sm:$0xff]   ;;  %v1518_v7 = vld [vmem:[%s1779_s6 + $0x8] sm:$0xff]   ;;  %s1544_s6 = sld [smem:[#allocation4 + $0x80]]  ;;  %s1550_s19 = sld [smem:[#allocation4 + $0x1]] }
  0x3b   :  { %218 = vst [vmem:[#allocation3 + $0x20] sm:$0xff] %v1413_v3  ;;  %219 = vst [vmem:[#allocation3 + $0x28] sm:$0xff] %v1413_v3  ;;  %1166 = vmatprep.subr.bf16.mxu0 %v1252_v1  ;;  %1168 = vmatprep.mubr.msk.bf16.mxu0 %vm130_vm0, %v1253_v2  ;;  %v1256_v8 = vld [vmem:[%s1777_s4 + $0x18] ss:$0 sps:$4 sm:$0x11]   ;;  %s1542_s4 = sld [smem:[#allocation4]] }
  0x3c   :  { %220 = vst [vmem:[#allocation3 + $0x30] sm:$0xff] %v1413_v3  ;;  %221 = vst [vmem:[#allocation3 + $0x38] sm:$0xff] %v1413_v3  ;;  %1177 = vmatpush3.bf16.msra.mxu1 %v1509_v5  ;;  %s1548_s18 = sld [smem:[#allocation7 + $0x80]]  ;;  %s1552_s20 = sld [smem:[#allocation4 + $0x81]]  ;;  %v1066_v10 = vld [vmem:[%s1780_s7] ss:$0 sm:$0xff] }
  0x3d   :  { %1178 = vmatprep.subr.bf16.mxu1 %v1413_v3  ;;  %s1554_s21 = sld [smem:[#allocation7 + $0x1]]  ;;  %s1558_s23 = sld [smem:[#allocation4 + $0x2]]  ;;  %vm999_vm14 = vcmask 254976   ;;  %vm1001_vm15 = vcmask 257026  }
  0x3e   :  { %1167 = vmatpush3.bf16.msra.mxu0 %v1252_v1  ;;  %s1556_s22 = sld [smem:[#allocation7 + $0x81]]  ;;  %s1560_s24 = sld [smem:[#allocation4 + $0x82]] }
  0x3f   :  { %1192 = vmatprep.subr.bf16.mxu0 %v1413_v3  ;;  %s1562_s25 = sld [smem:[#allocation7 + $0x2]]  ;;  %s1569_s27 = sld [smem:[#allocation4 + $0x3]] }
  0x40   :  { %1179 = vmatpush3.bf16.msra.mxu1 %v1518_v7  ;;  %s1564_s2 = sld [smem:[#allocation7 + $0x82]]  ;;  %s1571_s28 = sld [smem:[#allocation4 + $0x83]] }
  0x41   :  { %1169 = vmatmul.mubr.msk.bf16.vlgmr.msra.gmra.mrb[0].mxu0 %vm130_vm0, %v1254_v4  ;;  %1184 = vmatprep.subr.bf16.mxu1 %v1413_v3  ;;  %s1573_s29 = sld [smem:[#allocation7 + $0x3]]  ;;  %s1577_s5 = sld [smem:[#allocation4 + $0x4]] }
  0x42   :  { %1172 = vmatprep.mubr.msk.bf16.mxu0 %vm130_vm0, %v1255_v6  ;;  %1193 = vmatpush3.bf16.msra.mxu0 %v1509_v5  ;;  %s1575_s30 = sld [smem:[#allocation7 + $0x83]]  ;;  %s1579_s10 = sld [smem:[#allocation4 + $0x84]] }
  0x43   :  { %1194 = vmatprep.subr.bf16.mxu0 %v1413_v3  ;;  %1181 = vmatmul.mubr.bf16.vlgmr.msra.gmra.mrb[0].mxu1 %v1415_v9  ;;  %s1583_s7 = sld [smem:[#allocation7 + $0x4]]  ;;  %s1587_s12 = sld [smem:[#allocation4 + $0x5]] }
  0x44   :  { %1185 = vmatpush3.bf16.msra.mxu1 %v1509_v5  ;;  %1188 = vmatprep.mubr.msk.bf16.mxu1 %vm1414_vm1, %v1413_v3  ;;  %s1585_s11 = sld [smem:[#allocation7 + $0x84]]  ;;  %s1589_s13 = sld [smem:[#allocation4 + $0x85]] }
  0x45   :  { %1186 = vmatprep.subr.bf16.mxu1 %v1413_v3  ;;  %s1591_s14 = sld [smem:[#allocation7 + $0x5]]  ;;  %s1595_s16 = sld [smem:[#allocation4 + $0x6]] }
  0x46   :  { %1195 = vmatpush3.bf16.msra.mxu0 %v1518_v7  ;;  %s1593_s15 = sld [smem:[#allocation7 + $0x85]]  ;;  %s1597_s17 = sld [smem:[#allocation4 + $0x86]] }
  0x47   :  { %1208 = vmatprep.subr.bf16.mxu0 %v1413_v3  ;;  %s1599_s1 = sld [smem:[#allocation7 + $0x6]]  ;;  %s1603_s26 = sld [smem:[#allocation4 + $0x7]] }
  0x48   :  { %1187 = vmatpush3.bf16.msra.mxu1 %v1518_v7  ;;  %s1601_s3 = sld [smem:[#allocation7 + $0x86]]  ;;  %s1605_s9 = sld [smem:[#allocation4 + $0x87]] }
  0x49   :  { %1173 = vmatmul.mubr.msk.bf16.gmra.mrb[4].mxu0 %vm130_vm0, %v1256_v8  ;;  %1200 = vmatprep.subr.bf16.mxu1 %v1413_v3  ;;  %s1607_s8 = sld [smem:[#allocation7 + $0x7]] }
  0x4a   :  { %1196 = vmatprep.mubr.msk.bf16.mxu0 %vm1414_vm1, %v1413_v3 }
  0x4b   :  { %1787 = sst [smem:[#allocation20_spill]] %s1595_s16  ;;  %s223_s16 = scalar_lea.vmem [#allocation2], %s1542_s4 }
  0x4c   :  { %1788 = sst [smem:[#allocation21_spill]] %s1597_s17  ;;  %s1609_s17 = sld [smem:[#allocation7 + $0x87]] }
  0x4d   :  { %1789 = sst [smem:[#allocation22_spill]] %s1599_s1  ;;  %s255_s1 = scalar_lea.vmem [#allocation2], %s1544_s6 }
  0x4e   :  { %1790 = sst [smem:[#allocation23_spill]] %s1601_s3  ;;  %s287_s3 = scalar_lea.vmem [#allocation2], %s1546_s0 }
  0x4f   :  { %1791 = sst [smem:[#allocation24_spill]] %s1603_s26  ;;  %s227_s26 = scalar_lea.vmem [#allocation2], %s1550_s19 }
  0x50   :  { %1792 = sst [smem:[#allocation25_spill]] %s1605_s9  ;;  %s319_s9 = scalar_lea.vmem [#allocation2], %s1548_s18 }
  0x51   :  { %1793 = sst [smem:[#allocation26_spill]] %s1607_s8  ;;  %s259_s8 = scalar_lea.vmem [#allocation2], %s1552_s20 }
  0x52   :  { %s291_s4 = scalar_lea.vmem [#allocation2], %s1554_s21  ;;  %s323_s6 = scalar_lea.vmem [#allocation2], %s1556_s22 }
  0x53   :  { %s231_s0 = scalar_lea.vmem [#allocation2], %s1558_s23  ;;  %s295_s18 = scalar_lea.vmem [#allocation2], %s1562_s25 }
  0x54   :  { %s235_s19 = scalar_lea.vmem [#allocation2], %s1569_s27  ;;  %s267_s20 = scalar_lea.vmem [#allocation2], %s1571_s28 }
  0x55   :  { %s299_s21 = scalar_lea.vmem [#allocation2], %s1573_s29  ;;  %s331_s22 = scalar_lea.vmem [#allocation2], %s1575_s30 }
  0x56   :  { %s239_s23 = scalar_lea.vmem [#allocation2], %s1577_s5  ;;  %s303_s25 = scalar_lea.vmem [#allocation2], %s1583_s7 }
  0x57   :  { %s1794_s27 = sld [smem:[#allocation20_spill]]  ;;  %s243_s28 = scalar_lea.vmem [#allocation2], %s1587_s12 }
  0x58   :  { %s1795_s29 = sld [smem:[#allocation21_spill]]  ;;  %s1796_s30 = sld [smem:[#allocation22_spill]] }
  0x59   :  { %s275_s5 = scalar_lea.vmem [#allocation2], %s1589_s13 }
  0x5d   :  { %s247_s7 = scalar_lea.vmem [#allocation2], %s1794_s27 }
  0x5e   :  { %s279_s12 = scalar_lea.vmem [#allocation2], %s1795_s29 }
 0x114   :  { %v1170_v11 = vpop.f32.mrb[0].mxu0 }
 0x115   :  { %v186_v12 = vadd.f32 %v1170_v11, %v1066_v10  ;;  %v177_v13 = vpop.f32.mrb[1].mxu0 }
 0x116   :  { %v178_v14 = vadd.f32 %v1066_v10, %v177_v13  ;;  %v1171_v15 = vpop.f32.mrb[2].mxu0  ;;  %v1581_v19 = vpop.f32.mrb[0].mxu1 }
 0x117   :  { %209 = vst [vmem:[#allocation2 + $0x10] sm:$0xff] %v186_v12  ;;  %v189_v16 = vadd.f32 %v1171_v15, %v1066_v10  ;;  %v180_v17 = vpop.f32.mrb[3].mxu0  ;;  %v1182_v20 = vpop.f32.mrb[1].mxu1  ;;  %v350_v15 = vlaneseq }
 0x118   :  { %207 = vst [vmem:[#allocation2] sm:$0xff] %v178_v14  ;;  %v181_v18 = vadd.f32 %v1066_v10, %v180_v17  ;;  %v425_v21 = vpop.f32.mrb[2].mxu1 }
 0x119   :  { %210 = vst [vmem:[#allocation2 + $0x18] sm:$0xff] %v189_v16  ;;  %v1183_v22 = vpop.f32.mrb[3].mxu1  ;;  %v351_v16 = vshrl.u32 %v350_v15, 7 }
 0x11a   :  { %208 = vst [vmem:[#allocation2 + $0x8] sm:$0xff] %v181_v18 }
 0x11b   :  { %vm352_vm2 = vcmp.eq.s32.totalorder %v351_v16, 0  ;;  %vm356_vm3 = vcmp.eq.s32.totalorder %v351_v16, 2  ;;  %vm360_vm4 = vcmp.eq.s32.totalorder %v351_v16, 1  ;;  %vm364_vm5 = vcmp.eq.s32.totalorder %v351_v16, 3 }
 0x11c   :  { %v1174_v23 = vpop.f32.mrb[4].mxu0 }
 0x11d   :  { %v202_v24 = vadd.f32 %v1174_v23, %v1066_v10  ;;  %v193_v25 = vpop.f32.mrb[5].mxu0 }
 0x11e   :  { %v194_v26 = vadd.f32 %v1066_v10, %v193_v25  ;;  %v1175_v27 = vpop.f32.mrb[6].mxu0 }
 0x11f   :  { %213 = vst [vmem:[#allocation2 + $0x30] sm:$0x3] %v202_v24  ;;  %v196_v28 = vpop.f32.mrb[7].mxu0 }
 0x120   :  { %211 = vst [vmem:[#allocation2 + $0x20] sm:$0xff] %v194_v26  ;;  %v197_v29 = vadd.f32 %v1066_v10, %v196_v28 }
 0x122   :  { %212 = vst [vmem:[#allocation2 + $0x28] sm:$0xff] %v197_v29 }
 0x129   :  { %v224_v30 = vld [vmem:[%s223_s16] sm:$0x1]  ;;  %s1797_s16 = sld [smem:[#allocation23_spill]] }
 0x12a   :  { %v256_v31 = vld [vmem:[%s255_s1] sm:$0x1]  ;;  %225 = vst [vmem:[#allocation3] sm:$0x1] %v224_v30  ;;  %s339_s1 = scalar_lea.vmem [#allocation2], %s1593_s15 }
 0x12b   :  { %v288_v32 = vld [vmem:[%s287_s3] sm:$0x1]  ;;  %257 = vst [vmem:[#allocation3 + $0x1] sm:$0x1] %v256_v31  ;;  %s1798_s3 = sld [smem:[#allocation24_spill]] }
 0x12c   :  { %289 = vst [vmem:[#allocation3 + $0x2] sm:$0x1] %v288_v32  ;;  %v320_v33 = vld [vmem:[%s319_s9] sm:$0x1]  ;;  %s263_s9 = scalar_lea.vmem [#allocation2], %s1560_s24  ;;  %s271_s24 = scalar_lea.vmem [#allocation2], %s1579_s10 }
 0x12d   :  { %v228_v34 = vld [vmem:[%s227_s26] sm:$0x1]  ;;  %321 = vst [vmem:[#allocation3 + $0x3] sm:$0x1] %v320_v33  ;;  %s307_s10 = scalar_lea.vmem [#allocation2], %s1591_s14  ;;  %s1800_s26 = sld [smem:[#allocation26_spill]] }
 0x12e   :  { %v260_v35 = vld [vmem:[%s259_s8] sm:$0x1]  ;;  %229 = vst [vmem:[#allocation3 + $0x8] sm:$0x1] %v228_v34  ;;  %s327_s8 = scalar_lea.vmem [#allocation2], %s1564_s2  ;;  %s335_s2 = scalar_lea.vmem [#allocation2], %s1585_s11 }
 0x12f   :  { %261 = vst [vmem:[#allocation3 + $0x9] sm:$0x1] %v260_v35  ;;  %v292_v36 = vld [vmem:[%s291_s4] sm:$0x1]  ;;  %s1799_s11 = sld [smem:[#allocation25_spill]]  ;;  %s311_s4 = scalar_lea.vmem [#allocation2], %s1796_s30 }
 0x130   :  { %v324_v37 = vld [vmem:[%s323_s6] sm:$0x1]  ;;  %293 = vst [vmem:[#allocation3 + $0xa] sm:$0x1] %v292_v36  ;;  %s343_s13 = scalar_lea.vmem [#allocation2], %s1797_s16 }
 0x131   :  { %v232_v38 = vld [vmem:[%s231_s0] sm:$0x1]  ;;  %325 = vst [vmem:[#allocation3 + $0xb] sm:$0x1] %v324_v37  ;;  %s251_s14 = scalar_lea.vmem [#allocation2], %s1798_s3  ;;  %s347_s0 = scalar_lea.vmem [#allocation2], %s1609_s17 }
 0x132   :  { %233 = vst [vmem:[#allocation3 + $0x10] sm:$0x1] %v232_v38  ;;  %v264_v39 = vld [vmem:[%s263_s9] sm:$0x1]  ;;  %s1416_s9 = smov 64   ;;  %s353_s17 = sld [smem:[#allocation9]] }
 0x133   :  { %v296_v40 = vld [vmem:[%s295_s18] sm:$0x1]  ;;  %265 = vst [vmem:[#allocation3 + $0x11] sm:$0x1] %v264_v39  ;;  %s315_s6 = scalar_lea.vmem [#allocation2], %s1800_s26  ;;  %s1417_s18 = smov 32  }
 0x134   :  { %v328_v41 = vld [vmem:[%s327_s8] sm:$0x1]  ;;  %297 = vst [vmem:[#allocation3 + $0x12] sm:$0x1] %v296_v40  ;;  %v372_v57 = vld [vmem:[#allocation3] sm:$0xff]  ;;  %s357_s8 = sld [smem:[#allocation10]] }
 0x135   :  { %329 = vst [vmem:[#allocation3 + $0x13] sm:$0x1] %v328_v41  ;;  %v236_v42 = vld [vmem:[%s235_s19] sm:$0x1]  ;;  %v428_v60 = vadd.f32 %v1581_v19, %v372_v57  ;;  %s283_s15 = scalar_lea.vmem [#allocation2], %s1799_s11  ;;  %s1107_s19 = sld [smem:[#allocation9 + $0x1]] }
 0x136   :  { %v268_v43 = vld [vmem:[%s267_s20] sm:$0x1]  ;;  %237 = vst [vmem:[#allocation3 + $0x18] sm:$0x1] %v236_v42  ;;  %s1108_s20 = sld [smem:[#allocation10 + $0x1]] }
 0x137   :  { %v300_v44 = vld [vmem:[%s299_s21] sm:$0x1]  ;;  %269 = vst [vmem:[#allocation3 + $0x19] sm:$0x1] %v268_v43  ;;  %v1111_v0 = vmul.f32 -1.442695, %v428_v60 }
 0x138   :  { %301 = vst [vmem:[#allocation3 + $0x1a] sm:$0x1] %v300_v44  ;;  %v332_v45 = vld [vmem:[%s331_s22] sm:$0x1]  ;;  %v354_v17 = vstv %s353_s17  ;;  %s1418_s21 = smov [#allocation12]  }
 0x139   :  { %v240_v46 = vld [vmem:[%s239_s23] sm:$0x1]  ;;  %333 = vst [vmem:[#allocation3 + $0x1b] sm:$0x1] %v332_v45  ;;  %1259 = vpow2.f32 %v1111_v0  ;;  %v355_v18 = vsel %vm352_vm2, %v354_v17, 0  ;;  %s1009_s22 = sshll.u32 %s1418_s21, 4  ;;  %s1010_s22 = int_to_ptr.vmem [resolvable:$true] %s1009_s22 }
 0x13a   :  { %v272_v47 = vld [vmem:[%s271_s24] sm:$0x1]  ;;  %241 = vst [vmem:[#allocation3 + $0x20] sm:$0x1] %v240_v46  ;;  %v358_v19 = vstv %s357_s8  ;;  %s1419_s23 = smov [#allocation13]   ;;  %p1360_p7 = scmp.lt.s32.totalorder %s1010_s22, %s1010_s22 }
 0x13b   :  { %273 = vst [vmem:[#allocation3 + $0x21] sm:$0x1] %v272_v47  ;;  %v304_v48 = vld [vmem:[%s303_s25] sm:$0x1]  ;;  %v359_v20 = vsel %vm356_vm3, %v358_v19, %v355_v18  ;;  %v362_v21 = vstv %s1107_s19  ;;  %s1019_s24 = sshll.u32 %s1419_s23, 4  ;;  %s1355_s25 = scalar_lea.vmem %s1010_s22, 32  ;;  %s1020_s24 = int_to_ptr.vmem [resolvable:$true] %s1019_s24 }
 0x13c   :  { %v336_v49 = vld [vmem:[%s335_s2] sm:$0x1]  ;;  %305 = vst [vmem:[#allocation3 + $0x22] sm:$0x1] %v304_v48  ;;  %v363_v22 = vsel %vm360_vm4, %v362_v21, %v359_v20  ;;  %v366_v23 = vstv %s1108_s20  ;;  %p1356_p6 = scmp.ne.s32.totalorder %s1010_s22, %s1355_s25  ;;  %p1361_p8 = scmp.lt.s32.totalorder %s1355_s25, %s1355_s25 }
 0x13d   :  { %v244_v50 = vld [vmem:[%s243_s28] sm:$0x1]  ;;  %337 = vst [vmem:[#allocation3 + $0x23] sm:$0x1] %v336_v49  ;;  %v1647_v24 = vsel %vm364_vm5, %v366_v23, %v363_v22 }
 0x13e   :  { %245 = vst [vmem:[#allocation3 + $0x28] sm:$0x1] %v244_v50  ;;  %v276_v51 = vld [vmem:[%s275_s5] sm:$0x1]  ;;  %vm454_vm6 = vcmp.gt.s32.totalorder %v1647_v24, 0  ;;  %vm531_vm7 = vcmp.gt.s32.totalorder %v1647_v24, 1  ;;  %p1362_p9 = por %p1361_p8, %p1360_p7 }
 0x13f   :  { %v308_v52 = vld [vmem:[%s307_s10] sm:$0x1]  ;;  %277 = vst [vmem:[#allocation3 + $0x29] sm:$0x1] %v276_v51  ;;  %vm608_vm8 = vcmp.gt.s32.totalorder %v1647_v24, 2  ;;  %vm685_vm9 = vcmp.gt.s32.totalorder %v1647_v24, 3 }
 0x140   :  { %v340_v53 = vld [vmem:[%s339_s1] sm:$0x1]  ;;  %309 = vst [vmem:[#allocation3 + $0x2a] sm:$0x1] %v308_v52  ;;  %v611_v17 = vld [vmem:[#allocation3 + $0x18] sm:$0xff]  ;;  %vm762_vm10 = vcmp.gt.s32.totalorder %v1647_v24, 4  ;;  %p1363_p10 = pnand %p1362_p9, %p1356_p6 }
 0x141   :  { %341 = vst [vmem:[#allocation3 + $0x2b] sm:$0x1] %v340_v53  ;;  %v248_v54 = vld [vmem:[%s247_s7] sm:$0x1]  ;;  %vm839_vm11 = vcmp.gt.s32.totalorder %v1647_v24, 5  ;;  %vm916_vm12 = vcmp.gt.s32.totalorder %v1647_v24, 6 }
 0x142   :  { %v280_v55 = vld [vmem:[%s279_s12] sm:$0x1]  ;;  %249 = vst [vmem:[#allocation3 + $0x30] sm:$0x1] %v248_v54  ;;  %v534_v54 = vld [vmem:[#allocation3 + $0x10] sm:$0xff]  ;;  %vm993_vm13 = vcmp.gt.s32.totalorder %v1647_v24, 7 }
 0x143   :  { %v312_v56 = vld [vmem:[%s311_s4] sm:$0x1]  ;;  %281 = vst [vmem:[#allocation3 + $0x31] sm:$0x1] %v280_v55  ;;  %v1260_v1 = vpop.eup %1259 }
 0x144   :  { %313 = vst [vmem:[#allocation3 + $0x32] sm:$0x1] %v312_v56  ;;  %v344_v58 = vld [vmem:[%s343_s13] sm:$0x1]  ;;  %v432_v2 = vadd.f32 1.0, %v1260_v1 }
 0x145   :  { %v252_v59 = vld [vmem:[%s251_s14] sm:$0x1]  ;;  %345 = vst [vmem:[#allocation3 + $0x33] sm:$0x1] %v344_v58 }
 0x146   :  { %253 = vst [vmem:[#allocation3 + $0x38] sm:$0x1] %v252_v59  ;;  %v284_v61 = vld [vmem:[%s283_s15] sm:$0x1]  ;;  %1261 = vrcp.f32 %v432_v2 }
 0x147   :  { %v316_v62 = vld [vmem:[%s315_s6] sm:$0x1]  ;;  %285 = vst [vmem:[#allocation3 + $0x39] sm:$0x1] %v284_v61 }
 0x148   :  { %317 = vst [vmem:[#allocation3 + $0x3a] sm:$0x1] %v316_v62  ;;  %v348_v63 = vld [vmem:[%s347_s0] sm:$0x1] }
 0x149   :  { %349 = vst [vmem:[#allocation3 + $0x3b] sm:$0x1] %v348_v63  ;;  %v457_v30 = vld [vmem:[#allocation3 + $0x8] sm:$0xff] }
 0x150   :  { %v1262_v4 = vpop.eup %1261 }
 0x151   :  { %v435_v6 = vmul.f32 2.0, %v1262_v4  ;;  %v437_v11 = vmul.f32 0.0, %v1262_v4 }
 0x153   :  { %v1112_v8 = vadd.f32 -1.0, %v435_v6 }
 0x155   :  { %439 = vrot.lane.b32.xlu0 %v1112_v8, %s1416_s9 }
 0x1c7   :  { %v440_v9 = vpop.permute.xlu0 %439 }
 0x1c8   :  { %v442_v10 = vmul.f32 %v1262_v4, %v440_v9 }
 0x1ca   :  { %444 = vrot.lane.b32.xlu0 %v442_v10, %s1417_s18 }
 0x23c   :  { %v445_v12 = vpop.permute.xlu0 %444 }
 0x23d   :  { %v447_v13 = vadd.f32 %v445_v12, %v437_v11 }
 0x23f   :  { %1263 = vtanh.f32 %v447_v13  ;;  %v456_v44 = vsel %vm454_vm6, %v447_v13, 0.0 }
 0x249   :  { %v1264_v14 = vpop.eup %1263 }
 0x24a   :  { %450 = vrot.lane.b32.xlu1 %v1264_v14, %s1416_s9 }
 0x2bc   :  { %v451_v25 = vpop.permute.xlu1 %450 }
 0x2bd   :  { %v453_v26 = vmul.f32 %v1262_v4, %v451_v25 }
 0x2bf   :  { %v455_v27 = vsel %vm454_vm6, %v453_v26, 0.0 }
 0x2c0   :  { %v458_v28 = vpack.c.bf16 %v455_v27, %v455_v27 }
 0x2c2   :  { %460 = vrot.lane.b32.xlu1 %v458_v28, %s1417_s18 }
 0x334   :  { %v461_v29 = vpop.permute.xlu1 %460 }
 0x335   :  { %1189 = vmatmul.mubr.msk.bf16.vlgmr.msra.gmra.mrb[4].mxu1 %vm130_vm0, %v461_v29 }
 0x336   :  { %1201 = vmatpush3.bf16.msra.mxu1 %v1509_v5  ;;  %1204 = vmatprep.mubr.msk.bf16.mxu1 %vm1414_vm1, %v1413_v3 }
 0x337   :  { %1202 = vmatprep.subr.bf16.mxu1 %v1413_v3 }
 0x33a   :  { %1203 = vmatpush3.bf16.msra.mxu1 %v1518_v7 }
 0x33b   :  { %1216 = vmatprep.subr.bf16.mxu1 %v1413_v3 }
 0x408   :  { %v499_v31 = vpop.f32.mrb[4].mxu1 }
 0x409   :  { %v505_v32 = vadd.f32 %v499_v31, %v457_v30  ;;  %v1190_v33 = vpop.f32.mrb[5].mxu1 }
 0x40a   :  { %v502_v34 = vpop.f32.mrb[6].mxu1 }
 0x40b   :  { %v1114_v35 = vmul.f32 -1.442695, %v505_v32  ;;  %v1191_v36 = vpop.f32.mrb[7].mxu1 }
 0x40d   :  { %1265 = vpow2.f32 %v1114_v35 }
 0x417   :  { %v1266_v37 = vpop.eup %1265 }
 0x418   :  { %v509_v38 = vadd.f32 1.0, %v1266_v37 }
 0x41a   :  { %1267 = vrcp.f32 %v509_v38 }
 0x424   :  { %v1268_v39 = vpop.eup %1267 }
 0x425   :  { %v512_v40 = vmul.f32 2.0, %v1268_v39  ;;  %v514_v45 = vmul.f32 %v1268_v39, %v456_v44 }
 0x427   :  { %v1115_v41 = vadd.f32 -1.0, %v512_v40 }
 0x429   :  { %516 = vrot.lane.b32.xlu0 %v1115_v41, %s1416_s9 }
 0x49b   :  { %v517_v42 = vpop.permute.xlu0 %516 }
 0x49c   :  { %v519_v43 = vmul.f32 %v1268_v39, %v517_v42  ;;  %v688_v42 = vld [vmem:[#allocation3 + $0x20] sm:$0xff] }
 0x49e   :  { %521 = vrot.lane.b32.xlu1 %v519_v43, %s1417_s18 }
 0x510   :  { %v522_v46 = vpop.permute.xlu1 %521 }
 0x511   :  { %v524_v47 = vadd.f32 %v522_v46, %v514_v45 }
 0x513   :  { %1269 = vtanh.f32 %v524_v47  ;;  %v533_v6 = vsel %vm531_vm7, %v524_v47, %v456_v44 }
 0x51d   :  { %v1270_v48 = vpop.eup %1269 }
 0x51e   :  { %527 = vrot.lane.b32.xlu0 %v1270_v48, %s1416_s9 }
 0x590   :  { %v528_v49 = vpop.permute.xlu0 %527 }
 0x591   :  { %v530_v50 = vmul.f32 %v1268_v39, %v528_v49 }
 0x593   :  { %v532_v51 = vsel %vm531_vm7, %v530_v50, %v455_v27 }
 0x594   :  { %v535_v52 = vpack.c.bf16 %v532_v51, %v532_v51 }
 0x596   :  { %537 = vrot.lane.b32.xlu1 %v535_v52, %s1417_s18 }
 0x608   :  { %v538_v53 = vpop.permute.xlu1 %537 }
 0x609   :  { %1197 = vmatmul.mubr.msk.bf16.vlgmr.msra.gmra.mrb[8].mxu0 %vm130_vm0, %v538_v53 }
 0x60a   :  { %1209 = vmatpush3.bf16.msra.mxu0 %v1509_v5  ;;  %1212 = vmatprep.mubr.msk.bf16.mxu0 %vm1414_vm1, %v1413_v3 }
 0x60b   :  { %1210 = vmatprep.subr.bf16.mxu0 %v1413_v3 }
 0x60e   :  { %1211 = vmatpush3.bf16.msra.mxu0 %v1518_v7 }
 0x60f   :  { %1224 = vmatprep.subr.bf16.mxu0 %v1413_v3 }
 0x6dc   :  { %v576_v55 = vpop.f32.mrb[8].mxu0 }
 0x6dd   :  { %v582_v56 = vadd.f32 %v576_v55, %v534_v54  ;;  %v1198_v57 = vpop.f32.mrb[9].mxu0 }
 0x6de   :  { %v579_v58 = vpop.f32.mrb[10].mxu0 }
 0x6df   :  { %v1117_v59 = vmul.f32 -1.442695, %v582_v56  ;;  %v1199_v60 = vpop.f32.mrb[11].mxu0 }
 0x6e1   :  { %1271 = vpow2.f32 %v1117_v59 }
 0x6eb   :  { %v1272_v61 = vpop.eup %1271 }
 0x6ec   :  { %v586_v62 = vadd.f32 1.0, %v1272_v61 }
 0x6ee   :  { %1273 = vrcp.f32 %v586_v62 }
 0x6f8   :  { %v1274_v63 = vpop.eup %1273 }
 0x6f9   :  { %v589_v0 = vmul.f32 2.0, %v1274_v63  ;;  %v591_v8 = vmul.f32 %v1274_v63, %v533_v6 }
 0x6fb   :  { %v1118_v1 = vadd.f32 -1.0, %v589_v0 }
 0x6fd   :  { %593 = vrot.lane.b32.xlu0 %v1118_v1, %s1416_s9 }
 0x76f   :  { %v594_v2 = vpop.permute.xlu0 %593 }
 0x770   :  { %v596_v4 = vmul.f32 %v1274_v63, %v594_v2  ;;  %v765_v2 = vld [vmem:[#allocation3 + $0x28] sm:$0xff] }
 0x772   :  { %598 = vrot.lane.b32.xlu1 %v596_v4, %s1417_s18 }
 0x7e4   :  { %v599_v9 = vpop.permute.xlu1 %598 }
 0x7e5   :  { %v601_v10 = vadd.f32 %v599_v9, %v591_v8 }
 0x7e7   :  { %1275 = vtanh.f32 %v601_v10  ;;  %v610_v32 = vsel %vm608_vm8, %v601_v10, %v533_v6 }
 0x7f1   :  { %v1276_v11 = vpop.eup %1275 }
 0x7f2   :  { %604 = vrot.lane.b32.xlu0 %v1276_v11, %s1416_s9 }
 0x864   :  { %v605_v12 = vpop.permute.xlu0 %604 }
 0x865   :  { %v607_v13 = vmul.f32 %v1274_v63, %v605_v12 }
 0x867   :  { %v609_v14 = vsel %vm608_vm8, %v607_v13, %v532_v51 }
 0x868   :  { %v612_v15 = vpack.c.bf16 %v609_v14, %v609_v14 }
 0x86a   :  { %614 = vrot.lane.b32.xlu1 %v612_v15, %s1417_s18 }
 0x8dc   :  { %v615_v16 = vpop.permute.xlu1 %614 }
 0x8dd   :  { %1205 = vmatmul.mubr.msk.bf16.vlgmr.msra.gmra.mrb[8].mxu1 %vm130_vm0, %v615_v16 }
 0x8de   :  { %1217 = vmatpush3.bf16.msra.mxu1 %v1509_v5  ;;  %1220 = vmatprep.mubr.msk.bf16.mxu1 %vm1414_vm1, %v1413_v3 }
 0x8df   :  { %1218 = vmatprep.subr.bf16.mxu1 %v1413_v3 }
 0x8e2   :  { %1219 = vmatpush3.bf16.msra.mxu1 %v1518_v7 }
 0x8e3   :  { %1232 = vmatprep.subr.bf16.mxu1 %v1413_v3 }
 0x9b0   :  { %v653_v18 = vpop.f32.mrb[8].mxu1 }
 0x9b1   :  { %v659_v19 = vadd.f32 %v653_v18, %v611_v17  ;;  %v1206_v20 = vpop.f32.mrb[9].mxu1 }
 0x9b2   :  { %v656_v21 = vpop.f32.mrb[10].mxu1 }
 0x9b3   :  { %v1120_v22 = vmul.f32 -1.442695, %v659_v19  ;;  %v1207_v23 = vpop.f32.mrb[11].mxu1 }
 0x9b5   :  { %1277 = vpow2.f32 %v1120_v22 }
 0x9bf   :  { %v1278_v25 = vpop.eup %1277 }
 0x9c0   :  { %v663_v26 = vadd.f32 1.0, %v1278_v25 }
 0x9c2   :  { %1279 = vrcp.f32 %v663_v26 }
 0x9cc   :  { %v1280_v27 = vpop.eup %1279 }
 0x9cd   :  { %v666_v28 = vmul.f32 2.0, %v1280_v27  ;;  %v668_v33 = vmul.f32 %v1280_v27, %v610_v32 }
 0x9cf   :  { %v1121_v29 = vadd.f32 -1.0, %v666_v28 }
 0x9d1   :  { %670 = vrot.lane.b32.xlu0 %v1121_v29, %s1416_s9 }
 0xa43   :  { %v671_v30 = vpop.permute.xlu0 %670 }
 0xa44   :  { %v673_v31 = vmul.f32 %v1280_v27, %v671_v30 }
 0xa46   :  { %675 = vrot.lane.b32.xlu1 %v673_v31, %s1417_s18 }
 0xab8   :  { %v676_v34 = vpop.permute.xlu1 %675 }
 0xab9   :  { %v678_v35 = vadd.f32 %v676_v34, %v668_v33 }
 0xabb   :  { %1281 = vtanh.f32 %v678_v35  ;;  %v687_v56 = vsel %vm685_vm9, %v678_v35, %v610_v32 }
 0xac5   :  { %v1282_v36 = vpop.eup %1281 }
 0xac6   :  { %681 = vrot.lane.b32.xlu0 %v1282_v36, %s1416_s9 }
 0xb38   :  { %v682_v37 = vpop.permute.xlu0 %681 }
 0xb39   :  { %v684_v38 = vmul.f32 %v1280_v27, %v682_v37  ;;  %v842_v27 = vld [vmem:[#allocation3 + $0x30] sm:$0xff] }
 0xb3b   :  { %v686_v39 = vsel %vm685_vm9, %v684_v38, %v609_v14 }
 0xb3c   :  { %v689_v40 = vpack.c.bf16 %v686_v39, %v686_v39 }
 0xb3e   :  { %691 = vrot.lane.b32.xlu1 %v689_v40, %s1417_s18 }
 0xbb0   :  { %v692_v41 = vpop.permute.xlu1 %691 }
 0xbb1   :  { %1213 = vmatmul.mubr.msk.bf16.vlgmr.msra.gmra.mrb[12].mxu0 %vm130_vm0, %v692_v41 }
 0xbb2   :  { %1225 = vmatpush3.bf16.msra.mxu0 %v1509_v5  ;;  %1228 = vmatprep.mubr.msk.bf16.mxu0 %vm1414_vm1, %v1413_v3 }
 0xbb3   :  { %1226 = vmatprep.subr.bf16.mxu0 %v1413_v3 }
 0xbb6   :  { %1227 = vmatpush3.bf16.msra.mxu0 %v1518_v7 }
 0xc84   :  { %v730_v43 = vpop.f32.mrb[12].mxu0 }
 0xc85   :  { %v736_v44 = vadd.f32 %v730_v43, %v688_v42  ;;  %v1214_v45 = vpop.f32.mrb[13].mxu0 }
 0xc86   :  { %v733_v46 = vpop.f32.mrb[14].mxu0 }
 0xc87   :  { %v1123_v47 = vmul.f32 -1.442695, %v736_v44  ;;  %v1215_v48 = vpop.f32.mrb[15].mxu0 }
 0xc89   :  { %1283 = vpow2.f32 %v1123_v47 }
 0xc93   :  { %v1284_v49 = vpop.eup %1283 }
 0xc94   :  { %v740_v50 = vadd.f32 1.0, %v1284_v49 }
 0xc96   :  { %1285 = vrcp.f32 %v740_v50 }
 0xca0   :  { %v1286_v51 = vpop.eup %1285 }
 0xca1   :  { %v743_v52 = vmul.f32 2.0, %v1286_v51  ;;  %v745_v57 = vmul.f32 %v1286_v51, %v687_v56 }
 0xca3   :  { %v1124_v53 = vadd.f32 -1.0, %v743_v52 }
 0xca5   :  { %747 = vrot.lane.b32.xlu0 %v1124_v53, %s1416_s9 }
 0xd17   :  { %v748_v54 = vpop.permute.xlu0 %747 }
 0xd18   :  { %v750_v55 = vmul.f32 %v1286_v51, %v748_v54 }
 0xd1a   :  { %752 = vrot.lane.b32.xlu1 %v750_v55, %s1417_s18 }
 0xd8c   :  { %v753_v58 = vpop.permute.xlu1 %752 }
 0xd8d   :  { %v755_v59 = vadd.f32 %v753_v58, %v745_v57 }
 0xd8f   :  { %1287 = vtanh.f32 %v755_v59 }
 0xd99   :  { %v1288_v60 = vpop.eup %1287 }
 0xd9a   :  { %758 = vrot.lane.b32.xlu0 %v1288_v60, %s1416_s9 }
 0xe0c   :  { %v759_v61 = vpop.permute.xlu0 %758 }
 0xe0d   :  { %v761_v62 = vmul.f32 %v1286_v51, %v759_v61  ;;  %v919_v51 = vld [vmem:[#allocation3 + $0x38] sm:$0xff] }
 0xe0f   :  { %v763_v63 = vsel %vm762_vm10, %v761_v62, %v686_v39 }
 0xe10   :  { %v766_v0 = vpack.c.bf16 %v763_v63, %v763_v63 }
 0xe12   :  { %768 = vrot.lane.b32.xlu1 %v766_v0, %s1417_s18 }
 0xe84   :  { %v769_v1 = vpop.permute.xlu1 %768 }
 0xe85   :  { %1221 = vmatmul.mubr.msk.bf16.vlgmr.msra.gmra.mrb[12].mxu1 %vm130_vm0, %v769_v1 }
 0xe86   :  { %1233 = vmatpush3.bf16.msra.mxu1 %v1509_v5  ;;  %1236 = vmatprep.mubr.msk.bf16.mxu1 %vm1414_vm1, %v1413_v3 }
 0xe87   :  { %1234 = vmatprep.subr.bf16.mxu1 %v1413_v3 }
 0xe8a   :  { %1235 = vmatpush3.bf16.msra.mxu1 %v1518_v7  ;;  %v764_v7 = vsel %vm762_vm10, %v755_v59, %v687_v56 }
 0xf58   :  { %v807_v4 = vpop.f32.mrb[12].mxu1 }
 0xf59   :  { %v813_v6 = vadd.f32 %v807_v4, %v765_v2  ;;  %v1222_v8 = vpop.f32.mrb[13].mxu1 }
 0xf5a   :  { %v810_v9 = vpop.f32.mrb[14].mxu1 }
 0xf5b   :  { %v1126_v10 = vmul.f32 -1.442695, %v813_v6  ;;  %v1223_v11 = vpop.f32.mrb[15].mxu1 }
 0xf5d   :  { %1289 = vpow2.f32 %v1126_v10 }
 0xf67   :  { %v1290_v12 = vpop.eup %1289 }
 0xf68   :  { %v817_v13 = vadd.f32 1.0, %v1290_v12 }
 0xf6a   :  { %1291 = vrcp.f32 %v817_v13 }
 0xf74   :  { %v1292_v14 = vpop.eup %1291 }
 0xf75   :  { %v820_v5 = vmul.f32 2.0, %v1292_v14  ;;  %v822_v17 = vmul.f32 %v1292_v14, %v764_v7 }
 0xf77   :  { %v1127_v15 = vadd.f32 -1.0, %v820_v5 }
 0xf79   :  { %824 = vrot.lane.b32.xlu0 %v1127_v15, %s1416_s9 }
 0xfeb   :  { %v825_v16 = vpop.permute.xlu0 %824 }
 0xfec   :  { %v827_v3 = vmul.f32 %v1292_v14, %v825_v16 }
 0xfee   :  { %829 = vrot.lane.b32.xlu1 %v827_v3, %s1417_s18 }
0x1060   :  { %v830_v18 = vpop.permute.xlu1 %829 }
0x1061   :  { %v832_v19 = vadd.f32 %v830_v18, %v822_v17 }
0x1063   :  { %1293 = vtanh.f32 %v832_v19  ;;  %v841_v41 = vsel %vm839_vm11, %v832_v19, %v764_v7 }
0x106d   :  { %v1294_v20 = vpop.eup %1293 }
0x106e   :  { %835 = vrot.lane.b32.xlu0 %v1294_v20, %s1416_s9 }
0x10e0   :  { %v836_v21 = vpop.permute.xlu0 %835 }
0x10e1   :  { %v838_v22 = vmul.f32 %v1292_v14, %v836_v21 }
0x10e3   :  { %v840_v23 = vsel %vm839_vm11, %v838_v22, %v763_v63 }
0x10e4   :  { %v843_v25 = vpack.c.bf16 %v840_v23, %v840_v23 }
0x10e6   :  { %845 = vrot.lane.b32.xlu1 %v843_v25, %s1417_s18 }
0x1158   :  { %v846_v26 = vpop.permute.xlu1 %845 }
0x1159   :  { %1229 = vmatmul.mubr.msk.bf16.vlgmr.msra.gmra.mrb[16].mxu0 %vm130_vm0, %v846_v26 }
0x122c   :  { %v884_v28 = vpop.f32.mrb[16].mxu0 }
0x122d   :  { %v890_v29 = vadd.f32 %v884_v28, %v842_v27  ;;  %v1230_v30 = vpop.f32.mrb[17].mxu0 }
0x122e   :  { %v887_v31 = vpop.f32.mrb[18].mxu0 }
0x122f   :  { %v1129_v32 = vmul.f32 -1.442695, %v890_v29  ;;  %v1231_v33 = vpop.f32.mrb[19].mxu0 }
0x1231   :  { %1295 = vpow2.f32 %v1129_v32 }
0x123b   :  { %v1296_v34 = vpop.eup %1295 }
0x123c   :  { %v894_v35 = vadd.f32 1.0, %v1296_v34 }
0x123e   :  { %1297 = vrcp.f32 %v894_v35 }
0x1248   :  { %v1298_v36 = vpop.eup %1297 }
0x1249   :  { %v897_v37 = vmul.f32 2.0, %v1298_v36  ;;  %v899_v42 = vmul.f32 %v1298_v36, %v841_v41 }
0x124b   :  { %v1130_v38 = vadd.f32 -1.0, %v897_v37 }
0x124d   :  { %901 = vrot.lane.b32.xlu0 %v1130_v38, %s1416_s9 }
0x12bf   :  { %v902_v39 = vpop.permute.xlu0 %901 }
0x12c0   :  { %v904_v40 = vmul.f32 %v1298_v36, %v902_v39 }
0x12c2   :  { %906 = vrot.lane.b32.xlu1 %v904_v40, %s1417_s18 }
0x1334   :  { %v907_v43 = vpop.permute.xlu1 %906 }
0x1335   :  { %v909_v44 = vadd.f32 %v907_v43, %v899_v42 }
0x1337   :  { %1299 = vtanh.f32 %v909_v44  ;;  %v918_v1 = vsel %vm916_vm12, %v909_v44, %v841_v41 }
0x1341   :  { %v1300_v45 = vpop.eup %1299 }
0x1342   :  { %912 = vrot.lane.b32.xlu0 %v1300_v45, %s1416_s9 }
0x13b4   :  { %v913_v46 = vpop.permute.xlu0 %912 }
0x13b5   :  { %v915_v47 = vmul.f32 %v1298_v36, %v913_v46 }
0x13b7   :  { %v917_v48 = vsel %vm916_vm12, %v915_v47, %v840_v23 }
0x13b8   :  { %v920_v49 = vpack.c.bf16 %v917_v48, %v917_v48 }
0x13ba   :  { %922 = vrot.lane.b32.xlu1 %v920_v49, %s1417_s18 }
0x142c   :  { %v923_v50 = vpop.permute.xlu1 %922 }
0x142d   :  { %1237 = vmatmul.mubr.msk.bf16.vlgmr.msra.gmra.mrb[16].mxu1 %vm130_vm0, %v923_v50 }
0x1500   :  { %v961_v52 = vpop.f32.mrb[16].mxu1 }
0x1501   :  { %v967_v53 = vadd.f32 %v961_v52, %v919_v51  ;;  %v1238_v54 = vpop.f32.mrb[17].mxu1 }
0x1502   :  { %v964_v55 = vpop.f32.mrb[18].mxu1 }
0x1503   :  { %v1132_v56 = vmul.f32 -1.442695, %v967_v53  ;;  %v1239_v57 = vpop.f32.mrb[19].mxu1 }
0x1505   :  { %1301 = vpow2.f32 %v1132_v56 }
0x150f   :  { %v1302_v58 = vpop.eup %1301 }
0x1510   :  { %v971_v59 = vadd.f32 1.0, %v1302_v58 }
0x1512   :  { %1303 = vrcp.f32 %v971_v59 }
0x151c   :  { %v1304_v60 = vpop.eup %1303 }
0x151d   :  { %v974_v61 = vmul.f32 2.0, %v1304_v60  ;;  %v976_v2 = vmul.f32 %v1304_v60, %v918_v1 }
0x151f   :  { %v1133_v62 = vadd.f32 -1.0, %v974_v61 }
0x1521   :  { %978 = vrot.lane.b32.xlu0 %v1133_v62, %s1416_s9 }
0x1593   :  { %v979_v63 = vpop.permute.xlu0 %978 }
0x1594   :  { %v981_v0 = vmul.f32 %v1304_v60, %v979_v63 }
0x1596   :  { %983 = vrot.lane.b32.xlu1 %v981_v0, %s1417_s18 }
0x1608   :  { %v984_v4 = vpop.permute.xlu1 %983 }
0x1609   :  { %v986_v6 = vadd.f32 %v984_v4, %v976_v2 }
0x160b   :  { %1305 = vtanh.f32 %v986_v6 }
0x1615   :  { %v1306_v8 = vpop.eup %1305 }
0x1616   :  { %989 = vrot.lane.b32.xlu0 %v1306_v8, %s1416_s9 }
0x1688   :  { %v990_v9 = vpop.permute.xlu0 %989 }
0x1689   :  { %v992_v10 = vmul.f32 %v1304_v60, %v990_v9 }
0x168b   :  { %v994_v11 = vsel %vm993_vm13, %v992_v10, %v917_v48 }
0x168c   :  { %996 = vrot.lane.b32.xlu1 %v994_v11, %s1417_s18 }
0x16fe   :  { %v997_v12 = vpop.permute.xlu1 %996 }
0x16ff   :  { %1000 = vst.msk [vmem:[#allocation12] sm:$0x3] %vm999_vm14, %v997_v12 }
0x1700   :  { %1002 = vst.msk [vmem:[#allocation13 - $0x2] sm:$0xc] %vm1001_vm15, %v997_v12 }
0x1701   :  { %1366 = shalt.err (!%p1363_p10)
}
0x1702   :  { %s1801_s28 = sld [smem:[#allocation27_spill]] }
0x1708   :  { %s1367_s29 = scalar_lea.hbm %s1801_s28, 32 }
0x1709   :  { %p1368_p11 = scmp.ne.s32.totalorder %s1801_s28, %s1367_s29  ;;  %p1371_p12 = scmp.lt.u32.totalorder %s1367_s29, %s1801_s28 }
0x170b   :  { %p1373_p13 = pnand %p1371_p12, %p1368_p11 }
0x170d   :  { %1376 = shalt.err (!%p1373_p13)
}
0x170e   :  { %1012 = dma.vmem_to_hbm [thread:$0]  %s1010_s22, 32, %s1801_s28, [#allocation5]  }
0x170f   :  { %s1377_s7 = scalar_lea.vmem %s1020_s24, 32  ;;  %p1382_p1 = scmp.lt.s32.totalorder %s1020_s24, %s1020_s24 }
0x1710   :  { %p1378_p0 = scmp.ne.s32.totalorder %s1020_s24, %s1377_s7  ;;  %p1383_p2 = scmp.lt.s32.totalorder %s1377_s7, %s1377_s7 }
0x1712   :  { %p1384_p3 = por %p1383_p2, %p1382_p1 }
0x1714   :  { %p1385_p4 = pnand %p1384_p3, %p1378_p0 }
0x1716   :  { %1388 = shalt.err (!%p1385_p4)
}
0x1717   :  { %s1802_s26 = sld [smem:[#allocation28_spill]] }
0x171d   :  { %s1389_s4 = scalar_lea.hbm %s1802_s26, 32 }
0x171e   :  { %p1390_p5 = scmp.ne.s32.totalorder %s1802_s26, %s1389_s4  ;;  %p1393_p6 = scmp.lt.u32.totalorder %s1389_s4, %s1802_s26 }
0x1720   :  { %p1395_p7 = pnand %p1393_p6, %p1390_p5 }
0x1722   :  { %1398 = shalt.err (!%p1395_p7)
}
0x1723   :  { %1022 = dma.vmem_to_hbm [thread:$0]  %s1020_s24, 32, %s1802_s26, [#allocation14]  }
0x1724   :  { %1405 = dma.done.wait [#allocation5], 32  }
0x1725   :  { %1406 = vsyncadd [#allocation5], 4294967264 }
0x1726   :  { %1407 = dma.done.wait [#allocation14], 32  }
0x1727   :  { %1408 = vsyncadd [#allocation14], 4294967264 }
0x1728   :  { %1029 = vsyncpa [#allocation5], 1 }
0x1729   :  { %1030 = vsyncpa [#allocation14], 1 }
0x172a   :  { %1031 = vsyncpa [#allocation6], 1 }
0x172b   :  { %1032 = vsyncpa [#allocation8], 1 }
0x172c   :  { %1033 = vsyncpa [#allocation11], 1 }

</bundles_post_ra>
